<compile_context>
chip_gen: v5e
topology: v5e:2x2
jax: 0.10.0
libtpu: 0.0.40
codegen_flags: <defaults>
</compile_context>

<pallas_src>
import functools
import math

import jax
import jax.numpy as jnp
from jax import lax
from jax.experimental import pallas as pl
from jax.experimental.pallas import tpu as pltpu


# ----------------------------------------------------------------------------
# Pallas kernel 1: VAE image encoder (patch rows -> MLP -> frame mean pool -> mu)
# ----------------------------------------------------------------------------
def _vae_encoder_kernel(rows_ref, pool_ref, w1_ref, b1_ref, wmu_ref, bmu_ref,
                        mu_ref):
    # rows_ref: [FB*P, Dp] patch rows for FB frames; pool_ref: [FB, FB*P]
    x = rows_ref[...].astype(jnp.bfloat16)                        # [FB*P, Dp]
    h = jnp.dot(x, w1_ref[...],
                preferred_element_type=jnp.float32) + b1_ref[...]  # [FB*P, He]
    h = jax.nn.gelu(h)                                             # f32 VPU/EUP
    # Segmented mean over the P patches of each frame via one tiny matmul
    pooled = jnp.dot(pool_ref[...], h,
                     preferred_element_type=jnp.float32)           # [FB, He]
    mu = jnp.dot(pooled.astype(jnp.bfloat16), wmu_ref[...],
                 preferred_element_type=jnp.float32) + bmu_ref[...]  # [FB, Z]
    mu_ref[...] = mu


def vae_encode(patches, enc, frames_per_block=8):
    """patches: [BT, P, Dp] float32 -> mu: [BT, Z] float32."""
    BT, P, Dp = patches.shape
    FB = min(frames_per_block, BT)
    assert BT % FB == 0, "BT must be divisible by frames_per_block"
    Henc = enc["w1"].shape[1]
    Z = enc["wmu"].shape[1]

    rows = patches.reshape(BT * P, Dp)
    # Block-diagonal mean-pool matrix (same for every frame block).
    pool = jnp.kron(jnp.eye(FB, dtype=jnp.float32),
                    jnp.full((1, P), 1.0 / P, jnp.float32))         # [FB, FB*P]

    mu = pl.pallas_call(
        _vae_encoder_kernel,
        out_shape=jax.ShapeDtypeStruct((BT, Z), jnp.float32),
        grid=(BT // FB,),
        in_specs=[
            pl.BlockSpec((FB * P, Dp), lambda i: (i, 0)),
            pl.BlockSpec((FB, FB * P), lambda i: (0, 0)),
            pl.BlockSpec((Dp, Henc), lambda i: (0, 0)),
            pl.BlockSpec((1, Henc), lambda i: (0, 0)),
            pl.BlockSpec((Henc, Z), lambda i: (0, 0)),
            pl.BlockSpec((1, Z), lambda i: (0, 0)),
        ],
        out_specs=pl.BlockSpec((FB, Z), lambda i: (i, 0)),
        compiler_params=pltpu.CompilerParams(
            dimension_semantics=("parallel",),
            vmem_limit_bytes=32 * 1024 * 1024),
    )(rows, pool, enc["w1"], enc["b1"], enc["wmu"], enc["bmu"])
    return mu


# ----------------------------------------------------------------------------
# Pallas kernel 2: POTAR decision model (fused embed + 1-layer causal xformer)
# ----------------------------------------------------------------------------
def _decision_kernel(sx_ref, sext_ref, abase_ref, mask_ref,
                     wsp_ref, wqkv_ref, wo_ref,
                     ln1g_ref, ln1b_ref, ln2g_ref, ln2b_ref,
                     wf1_ref, bf1_ref, wf2_ref, bf2_ref,
                     cache_ref):
    H = sext_ref.shape[-1]

    # --- token embeddings ----------------------------------------------------
    # state token: [z ; prompt] @ w_sp   (+ precomputed tag_emb + pos_s + bias)
    sx = sx_ref[0].astype(jnp.bfloat16)                            # [NT, Z+Dp]
    s_tok = jnp.dot(sx, wsp_ref[...],
                    preferred_element_type=jnp.float32) + sext_ref[0]
    # action token: precomputed (act_emb + reward*wr + pos_a + bias) in wrapper
    a_tok = abase_ref[0]                                           # [NT, H]

    # Block layout [states ; actions]; interleaved temporal order is enforced
    # by the precomputed additive causal mask + positional embeddings.
    x = jnp.concatenate([s_tok, a_tok], axis=0)                    # [L, H] f32

    def layernorm(v, g, b):
        m = jnp.mean(v, axis=-1, keepdims=True)
        var = jnp.mean((v - m) ** 2, axis=-1, keepdims=True)
        return (v - m) * lax.rsqrt(var + 1e-5) * g + b

    # --- self attention (pre-LN), fused QKV, scale folded into Wq ------------
    xn = layernorm(x, ln1g_ref[...], ln1b_ref[...])
    qkv = jnp.dot(xn.astype(jnp.bfloat16), wqkv_ref[...],
                  preferred_element_type=jnp.float32)              # [L, 3H]
    q = qkv[:, :H]
    k = qkv[:, H:2 * H]
    v = qkv[:, 2 * H:]
    scores = lax.dot_general(
        q.astype(jnp.bfloat16), k.astype(jnp.bfloat16),
        dimension_numbers=(((1,), (1,)), ((), ())),
        preferred_element_type=jnp.float32)                        # [L, L]
    scores = scores + mask_ref[...]                                # additive mask
    m = jnp.max(scores, axis=-1, keepdims=True)
    p = jnp.exp(scores - m)                                        # EUP
    denom = jnp.sum(p, axis=-1, keepdims=True)
    attn = p * pl.reciprocal(denom, approx=True)                   # EUP
    ctx = jnp.dot(attn.astype(jnp.bfloat16), v.astype(jnp.bfloat16),
                  preferred_element_type=jnp.float32)              # [L, H]
    x = x + jnp.dot(ctx.astype(jnp.bfloat16), wo_ref[...],
                    preferred_element_type=jnp.float32)

    # --- feed forward ---------------------------------------------------------
    xn = layernorm(x, ln2g_ref[...], ln2b_ref[...])
    hff = jnp.dot(xn.astype(jnp.bfloat16), wf1_ref[...],
                  preferred_element_type=jnp.float32) + bf1_ref[...]
    hff = jax.nn.gelu(hff)
    x = x + jnp.dot(hff.astype(jnp.bfloat16), wf2_ref[...],
                    preferred_element_type=jnp.float32) + bf2_ref[...]

    # Only the cache is stored; wm/pm are slices of it (taken in the wrapper).
    cache_ref[0] = x                                               # [L, H]


def decision_model(sx, s_extra, a_base, mask, dp):
    """Returns (wm_out, pm_out, new_cache)."""
    B, NT, Dsx = sx.shape
    H = dp["wo"].shape[0]
    F = dp["wf1"].shape[1]
    L = 2 * NT

    full2 = lambda shape: pl.BlockSpec(shape, lambda b: (0, 0))

    cache = pl.pallas_call(
        _decision_kernel,
        out_shape=jax.ShapeDtypeStruct((B, L, H), jnp.float32),
        grid=(B,),
        in_specs=[
            pl.BlockSpec((1, NT, Dsx), lambda b: (b, 0, 0)),
            pl.BlockSpec((1, NT, H), lambda b: (b, 0, 0)),
            pl.BlockSpec((1, NT, H), lambda b: (b, 0, 0)),
            full2((L, L)),
            full2((Dsx, H)),
            full2((H, 3 * H)),
            full2((H, H)),
            full2((1, H)), full2((1, H)), full2((1, H)), full2((1, H)),
            full2((H, F)), full2((1, F)), full2((F, H)), full2((1, H)),
        ],
        out_specs=pl.BlockSpec((1, L, H), lambda b: (b, 0, 0)),
        compiler_params=pltpu.CompilerParams(
            dimension_semantics=("parallel",),
            vmem_limit_bytes=32 * 1024 * 1024),
    )(sx, s_extra, a_base, mask,
      dp["w_sp"], dp["wqkv"], dp["wo"],
      dp["ln1g"], dp["ln1b"], dp["ln2g"], dp["ln2b"],
      dp["wf1"], dp["bf1"], dp["wf2"], dp["bf2"])

    pm_out = cache[:, :NT, :]     # state-token positions  -> policy head input
    wm_out = cache[:, NT:, :]     # action-token positions -> world-model input
    return wm_out, pm_out, cache


# ----------------------------------------------------------------------------
# Parameter construction + full forward wrapper (glue in plain JAX)
# ----------------------------------------------------------------------------
def init_params(key, *, C, patch, Henc, Z, Dp, Ntag, Na, H, NT):
    ks = jax.random.split(key, 16)
    n = lambda k, s, sc=0.02: sc * jax.random.normal(k, s, dtype=jnp.float32)
    F = 4 * H
    Dpatch = C * patch * patch

    enc = dict(
        w1=n(ks[0], (Dpatch, Henc)).astype(jnp.bfloat16),
        b1=jnp.zeros((1, Henc), jnp.float32),
        wmu=n(ks[1], (Henc, Z)).astype(jnp.bfloat16),
        bmu=jnp.zeros((1, Z), jnp.float32),
    )

    # Fused state-token projection: [z ; prompt] -> H
    ws, wp = n(ks[2], (Z, H)), n(ks[3], (Dp, H))
    w_sp = jnp.concatenate([ws, wp], axis=0).astype(jnp.bfloat16)
    # Fused QKV with 1/sqrt(H) folded into the Q columns.
    wq, wk, wv = n(ks[7], (H, H)), n(ks[8], (H, H)), n(ks[9], (H, H))
    wqkv = jnp.concatenate([wq * (1.0 / math.sqrt(H)), wk, wv],
                           axis=1).astype(jnp.bfloat16)

    dec = dict(
        w_sp=w_sp,
        wt=n(ks[4], (Ntag, H)),            # embedding tables used via jnp.take
        wa=n(ks[5], (Na, H)),
        wr=n(ks[6], (1, H)),
        bs=jnp.zeros((1, H), jnp.float32), ba=jnp.zeros((1, H), jnp.float32),
        pos_s=n(ks[10], (NT, H)), pos_a=n(ks[11], (NT, H)),
        wqkv=wqkv,
        wo=n(ks[12], (H, H)).astype(jnp.bfloat16),
        ln1g=jnp.ones((1, H), jnp.float32), ln1b=jnp.zeros((1, H), jnp.float32),
        ln2g=jnp.ones((1, H), jnp.float32), ln2b=jnp.zeros((1, H), jnp.float32),
        wf1=n(ks[13], (H, F)).astype(jnp.bfloat16),
        bf1=jnp.zeros((1, F), jnp.float32),
        wf2=n(ks[14], (F, H)).astype(jnp.bfloat16),
        bf2=jnp.zeros((1, H), jnp.float32),
    )
    return dict(enc=enc, dec=dec)


def patchify(obs, patch):
    # obs: [B, NT, C, H, W]  (NCHW frames, PyTorch convention)
    B, NT, C, H, W = obs.shape
    Hp, Wp = H // patch, W // patch
    x = obs.reshape(B * NT, C, Hp, patch, Wp, patch)
    x = x.transpose(0, 2, 4, 1, 3, 5)                 # [BT, Hp, Wp, C, ph, pw]
    return x.reshape(B * NT, Hp * Wp, C * patch * patch)


def build_potar_mask(NT):
    """Additive causal mask for blocked [states ; actions] layout.

    Temporal order: state token t -> 2t, action token t -> 2t+1.
    """
    L = 2 * NT
    idx = jnp.arange(L)
    order = jnp.where(idx < NT, 2 * idx, 2 * (idx - NT) + 1)
    allowed = order[None, :] <= order[:, None]
    return jnp.where(allowed, 0.0, -1e9).astype(jnp.float32)


@functools.partial(jax.jit, static_argnames=("patch",))
def e2e_objnav_forward(params, observations, prompts, tags, actions, rewards,
                       *, patch):
    """Mirrors E2EObjNavSA.forward: returns (z_rec, wm_out, pm_out, new_cache)."""
    B, NT = actions.shape

    # ---- VAE (no_grad in original): encode frames to latents ----------------
    patches = patchify(observations.astype(jnp.float32), patch)
    mu = vae_encode(patches, params["enc"])                  # [B*NT, Z]
    z_rec = lax.stop_gradient(mu.reshape(B, NT, -1))         # deterministic latent

    # ---- Decision model inputs (embedding lookups / tiny glue in XLA) -------
    dp = params["dec"]
    sx = jnp.concatenate([z_rec, prompts.astype(jnp.float32)], axis=-1)
    tag_emb = jnp.take(dp["wt"], tags, axis=0)               # [B, NT, H]
    act_emb = jnp.take(dp["wa"], actions, axis=0)            # [B, NT, H]
    s_extra = tag_emb + dp["pos_s"][None] + dp["bs"][None]
    a_base = (act_emb + rewards.astype(jnp.float32)[..., None] * dp["wr"][None]
              + dp["pos_a"][None] + dp["ba"][None])
    mask = build_potar_mask(NT)

    wm_out, pm_out, new_cache = decision_model(sx, s_extra, a_base, mask, dp)
    return z_rec, wm_out, pm_out, new_cache


# ----------------------------------------------------------------------------
if __name__ == "__main__":
    # Small shapes consistent with the module's forward signature.
    B, NT = 2, 8
    C, IMG = 3, 16
    PATCH = 4
    HENC, Z = 128, 32         # image encoder hidden / vae_latent_size
    DP = 16                   # prompt feature dim
    NTAG, NACT = 4, 6         # tag vocab / action_dim
    H = 128                   # decision model hidden (lane-dense)

    key = jax.random.PRNGKey(0)
    kp, ko, kpr, kt, ka, kr = jax.random.split(key, 6)

    params = init_params(kp, C=C, patch=PATCH, Henc=HENC, Z=Z,
                         Dp=DP, Ntag=NTAG, Na=NACT, H=H, NT=NT)

    observations = jax.random.uniform(ko, (B, NT, C, IMG, IMG), jnp.float32)
    prompts = jax.random.normal(kpr, (B, NT, DP), jnp.float32)
    tags = jax.random.randint(kt, (B, NT), 0, NTAG, jnp.int32)
    actions = jax.random.randint(ka, (B, NT), 0, NACT, jnp.int32)
    rewards = jax.random.normal(kr, (B, NT), jnp.float32)

    z_rec, wm_out, pm_out, new_cache = e2e_objnav_forward(
        params, observations, prompts, tags, actions, rewards, patch=PATCH)
    jax.block_until_ready((z_rec, wm_out, pm_out, new_cache))

    assert z_rec.shape == (B, NT, Z)
    assert wm_out.shape == (B, NT, H)
    assert pm_out.shape == (B, NT, H)
    assert new_cache.shape == (B, 2 * NT, H)
    assert bool(jnp.all(jnp.isfinite(z_rec)))
    assert bool(jnp.all(jnp.isfinite(wm_out)))
    assert bool(jnp.all(jnp.isfinite(pm_out)))
    assert bool(jnp.all(jnp.isfinite(new_cache)))
    print("KERNEL_OK")
</pallas_src>

<mosaic_0001>
module attributes {stable_mosaic.version = 11 : i64} {
  func.func @_vae_encoder_kernel(%arg0: i32, %arg1: memref<128x48xf32, #tpu.memory_space<vmem>>, %arg2: memref<8x128xf32, #tpu.memory_space<vmem>>, %arg3: memref<48x128xbf16, #tpu.memory_space<vmem>>, %arg4: memref<1x128xf32, #tpu.memory_space<vmem>>, %arg5: memref<128x32xbf16, #tpu.memory_space<vmem>>, %arg6: memref<1x32xf32, #tpu.memory_space<vmem>>, %arg7: memref<8x32xf32, #tpu.memory_space<vmem>>) attributes {dimension_semantics = [#tpu.dimension_semantics<parallel>], iteration_bounds = array<i64: 2>, scalar_prefetch = 0 : i64, scratch_operands = 0 : i64, tpu.core_type = #tpu.core_type<tc>, window_params = [{transform_indices = @transform_0, window_bounds = array<i64: 128, 48>}, {pipeline_mode = #tpu.pipeline_mode<synchronous>, transform_indices = @transform_1, window_bounds = array<i64: 8, 128>}, {pipeline_mode = #tpu.pipeline_mode<synchronous>, transform_indices = @transform_2, window_bounds = array<i64: 48, 128>}, {pipeline_mode = #tpu.pipeline_mode<synchronous>, transform_indices = @transform_3, window_bounds = array<i64: 1, 128>}, {pipeline_mode = #tpu.pipeline_mode<synchronous>, transform_indices = @transform_4, window_bounds = array<i64: 128, 32>}, {pipeline_mode = #tpu.pipeline_mode<synchronous>, transform_indices = @transform_5, window_bounds = array<i64: 1, 32>}, {transform_indices = @transform_6, window_bounds = array<i64: 8, 32>}]} {
    %c0 = arith.constant 0 : index
    %c0_0 = arith.constant 0 : index
    %0 = vector.load %arg1[%c0, %c0_0] : memref<128x48xf32, #tpu.memory_space<vmem>>, vector<128x48xf32>
    %1 = arith.truncf %0 : vector<128x48xf32> to vector<128x48xbf16>
    %c0_1 = arith.constant 0 : index
    %c0_2 = arith.constant 0 : index
    %2 = vector.load %arg3[%c0_1, %c0_2] : memref<48x128xbf16, #tpu.memory_space<vmem>>, vector<48x128xbf16>
    %cst = arith.constant dense<0.000000e+00> : vector<128x128xf32>
    %3 = tpu.matmul %1, %2, %cst {dimension_numbers = #tpu.dot_dimension_numbers<[1], [0], [0], [1], [0, 0, 1, 1], [], []>} : vector<128x48xbf16>, vector<48x128xbf16>, vector<128x128xf32> -> vector<128x128xf32>
    %c0_3 = arith.constant 0 : index
    %c0_4 = arith.constant 0 : index
    %4 = vector.load %arg4[%c0_3, %c0_4] : memref<1x128xf32, #tpu.memory_space<vmem>>, vector<1x128xf32>
    %5 = vector.broadcast %4 : vector<1x128xf32> to vector<128x128xf32>
    %6 = arith.addf %3, %5 : vector<128x128xf32>
    %7 = arith.mulf %6, %6 : vector<128x128xf32>
    %8 = arith.mulf %6, %7 : vector<128x128xf32>
    %cst_5 = arith.constant 4.471500e-02 : f32
    %9 = vector.broadcast %cst_5 : f32 to vector<128x128xf32>
    %10 = arith.mulf %9, %8 : vector<128x128xf32>
    %11 = arith.addf %6, %10 : vector<128x128xf32>
    %cst_6 = arith.constant 0.797884583 : f32
    %12 = vector.broadcast %cst_6 : f32 to vector<128x128xf32>
    %13 = arith.mulf %12, %11 : vector<128x128xf32>
    %14 = math.tanh %13 : vector<128x128xf32>
    %cst_7 = arith.constant 1.000000e+00 : f32
    %15 = vector.broadcast %cst_7 : f32 to vector<128x128xf32>
    %16 = arith.addf %15, %14 : vector<128x128xf32>
    %cst_8 = arith.constant 5.000000e-01 : f32
    %17 = vector.broadcast %cst_8 : f32 to vector<128x128xf32>
    %18 = arith.mulf %17, %16 : vector<128x128xf32>
    %19 = arith.mulf %6, %18 : vector<128x128xf32>
    %c0_9 = arith.constant 0 : index
    %c0_10 = arith.constant 0 : index
    %20 = vector.load %arg2[%c0_9, %c0_10] : memref<8x128xf32, #tpu.memory_space<vmem>>, vector<8x128xf32>
    %cst_11 = arith.constant dense<0.000000e+00> : vector<8x128xf32>
    %21 = tpu.matmul %20, %19, %cst_11 {dimension_numbers = #tpu.dot_dimension_numbers<[1], [0], [0], [1], [0, 0, 1, 1], [], []>} : vector<8x128xf32>, vector<128x128xf32>, vector<8x128xf32> -> vector<8x128xf32>
    %22 = arith.truncf %21 : vector<8x128xf32> to vector<8x128xbf16>
    %c0_12 = arith.constant 0 : index
    %c0_13 = arith.constant 0 : index
    %23 = vector.load %arg5[%c0_12, %c0_13] : memref<128x32xbf16, #tpu.memory_space<vmem>>, vector<128x32xbf16>
    %cst_14 = arith.constant dense<0.000000e+00> : vector<8x32xf32>
    %24 = tpu.matmul %22, %23, %cst_14 {dimension_numbers = #tpu.dot_dimension_numbers<[1], [0], [0], [1], [0, 0, 1, 1], [], []>} : vector<8x128xbf16>, vector<128x32xbf16>, vector<8x32xf32> -> vector<8x32xf32>
    %c0_15 = arith.constant 0 : index
    %c0_16 = arith.constant 0 : index
    %25 = vector.load %arg6[%c0_15, %c0_16] : memref<1x32xf32, #tpu.memory_space<vmem>>, vector<1x32xf32>
    %26 = vector.broadcast %25 : vector<1x32xf32> to vector<8x32xf32>
    %27 = arith.addf %24, %26 : vector<8x32xf32>
    %c0_17 = arith.constant 0 : index
    %c0_18 = arith.constant 0 : index
    %28 = vector.load %arg7[%c0_17, %c0_18] : memref<8x32xf32, #tpu.memory_space<vmem>>, vector<8x32xf32>
    tpu.vector_store %arg7[%c0_17, %c0_18], %27 {strides = array<i32>} : memref<8x32xf32, #tpu.memory_space<vmem>>, vector<8x32xf32>,
    return
  }
  func.func @transform_0(%arg0: i32) -> (i32, i32) {
    %c0_i32 = arith.constant 0 : i32
    %c0_i32_0 = arith.constant 0 : i32
    return %arg0, %c0_i32 : i32, i32
  }
  func.func @transform_1(%arg0: i32) -> (i32, i32) {
    %c0_i32 = arith.constant 0 : i32
    %c0_i32_0 = arith.constant 0 : i32
    %c0_i32_1 = arith.constant 0 : i32
    return %c0_i32, %c0_i32_0 : i32, i32
  }
  func.func @transform_2(%arg0: i32) -> (i32, i32) {
    %c0_i32 = arith.constant 0 : i32
    %c0_i32_0 = arith.constant 0 : i32
    %c0_i32_1 = arith.constant 0 : i32
    return %c0_i32, %c0_i32_0 : i32, i32
  }
  func.func @transform_3(%arg0: i32) -> (i32, i32) {
    %c0_i32 = arith.constant 0 : i32
    %c0_i32_0 = arith.constant 0 : i32
    %c0_i32_1 = arith.constant 0 : i32
    return %c0_i32, %c0_i32_0 : i32, i32
  }
  func.func @transform_4(%arg0: i32) -> (i32, i32) {
    %c0_i32 = arith.constant 0 : i32
    %c0_i32_0 = arith.constant 0 : i32
    %c0_i32_1 = arith.constant 0 : i32
    return %c0_i32, %c0_i32_0 : i32, i32
  }
  func.func @transform_5(%arg0: i32) -> (i32, i32) {
    %c0_i32 = arith.constant 0 : i32
    %c0_i32_0 = arith.constant 0 : i32
    %c0_i32_1 = arith.constant 0 : i32
    return %c0_i32, %c0_i32_0 : i32, i32
  }
  func.func @transform_6(%arg0: i32) -> (i32, i32) {
    %c0_i32 = arith.constant 0 : i32
    %c0_i32_0 = arith.constant 0 : i32
    return %arg0, %c0_i32 : i32, i32
  }
}

module attributes {stable_mosaic.version = 11 : i64} {
  func.func @_decision_kernel(%arg0: i32, %arg1: memref<1x8x48xf32, #tpu.memory_space<vmem>>, %arg2: memref<1x8x128xf32, #tpu.memory_space<vmem>>, %arg3: memref<1x8x128xf32, #tpu.memory_space<vmem>>, %arg4: memref<16x16xf32, #tpu.memory_space<vmem>>, %arg5: memref<48x128xbf16, #tpu.memory_space<vmem>>, %arg6: memref<128x384xbf16, #tpu.memory_space<vmem>>, %arg7: memref<128x128xbf16, #tpu.memory_space<vmem>>, %arg8: memref<1x128xf32, #tpu.memory_space<vmem>>, %arg9: memref<1x128xf32, #tpu.memory_space<vmem>>, %arg10: memref<1x128xf32, #tpu.memory_space<vmem>>, %arg11: memref<1x128xf32, #tpu.memory_space<vmem>>, %arg12: memref<128x512xbf16, #tpu.memory_space<vmem>>, %arg13: memref<1x512xf32, #tpu.memory_space<vmem>>, %arg14: memref<512x128xbf16, #tpu.memory_space<vmem>>, %arg15: memref<1x128xf32, #tpu.memory_space<vmem>>, %arg16: memref<1x16x128xf32, #tpu.memory_space<vmem>>) attributes {dimension_semantics = [#tpu.dimension_semantics<parallel>], iteration_bounds = array<i64: 2>, scalar_prefetch = 0 : i64, scratch_operands = 0 : i64, tpu.core_type = #tpu.core_type<tc>, window_params = [{transform_indices = @transform_0, window_bounds = array<i64: 1, 8, 48>}, {transform_indices = @transform_1, window_bounds = array<i64: 1, 8, 128>}, {transform_indices = @transform_2, window_bounds = array<i64: 1, 8, 128>}, {pipeline_mode = #tpu.pipeline_mode<synchronous>, transform_indices = @transform_3, window_bounds = array<i64: 16, 16>}, {pipeline_mode = #tpu.pipeline_mode<synchronous>, transform_indices = @transform_4, window_bounds = array<i64: 48, 128>}, {pipeline_mode = #tpu.pipeline_mode<synchronous>, transform_indices = @transform_5, window_bounds = array<i64: 128, 384>}, {pipeline_mode = #tpu.pipeline_mode<synchronous>, transform_indices = @transform_6, window_bounds = array<i64: 128, 128>}, {pipeline_mode = #tpu.pipeline_mode<synchronous>, transform_indices = @transform_7, window_bounds = array<i64: 1, 128>}, {pipeline_mode = #tpu.pipeline_mode<synchronous>, transform_indices = @transform_8, window_bounds = array<i64: 1, 128>}, {pipeline_mode = #tpu.pipeline_mode<synchronous>, transform_indices = @transform_9, window_bounds = array<i64: 1, 128>}, {pipeline_mode = #tpu.pipeline_mode<synchronous>, transform_indices = @transform_10, window_bounds = array<i64: 1, 128>}, {pipeline_mode = #tpu.pipeline_mode<synchronous>, transform_indices = @transform_11, window_bounds = array<i64: 128, 512>}, {pipeline_mode = #tpu.pipeline_mode<synchronous>, transform_indices = @transform_12, window_bounds = array<i64: 1, 512>}, {pipeline_mode = #tpu.pipeline_mode<synchronous>, transform_indices = @transform_13, window_bounds = array<i64: 512, 128>}, {pipeline_mode = #tpu.pipeline_mode<synchronous>, transform_indices = @transform_14, window_bounds = array<i64: 1, 128>}, {transform_indices = @transform_15, window_bounds = array<i64: 1, 16, 128>}]} {
    %c0 = arith.constant 0 : index
    %c0_0 = arith.constant 0 : index
    %c0_1 = arith.constant 0 : index
    %0 = vector.load %arg1[%c0, %c0_0, %c0_1] : memref<1x8x48xf32, #tpu.memory_space<vmem>>, vector<1x8x48xf32>
    %1 = vector.shape_cast %0 : vector<1x8x48xf32> to vector<8x48xf32>
    %2 = arith.truncf %1 : vector<8x48xf32> to vector<8x48xbf16>
    %c0_2 = arith.constant 0 : index
    %c0_3 = arith.constant 0 : index
    %3 = vector.load %arg5[%c0_2, %c0_3] : memref<48x128xbf16, #tpu.memory_space<vmem>>, vector<48x128xbf16>
    %cst = arith.constant dense<0.000000e+00> : vector<8x128xf32>
    %4 = tpu.matmul %2, %3, %cst {dimension_numbers = #tpu.dot_dimension_numbers<[1], [0], [0], [1], [0, 0, 1, 1], [], []>} : vector<8x48xbf16>, vector<48x128xbf16>, vector<8x128xf32> -> vector<8x128xf32>
    %c0_4 = arith.constant 0 : index
    %c0_5 = arith.constant 0 : index
    %c0_6 = arith.constant 0 : index
    %5 = vector.load %arg2[%c0_4, %c0_5, %c0_6] : memref<1x8x128xf32, #tpu.memory_space<vmem>>, vector<1x8x128xf32>
    %6 = vector.shape_cast %5 : vector<1x8x128xf32> to vector<8x128xf32>
    %7 = arith.addf %4, %6 : vector<8x128xf32>
    %c0_7 = arith.constant 0 : index
    %c0_8 = arith.constant 0 : index
    %c0_9 = arith.constant 0 : index
    %8 = vector.load %arg3[%c0_7, %c0_8, %c0_9] : memref<1x8x128xf32, #tpu.memory_space<vmem>>, vector<1x8x128xf32>
    %9 = vector.shape_cast %8 : vector<1x8x128xf32> to vector<8x128xf32>
    %10 = tpu.concatenate %7, %9 in 0 : vector<8x128xf32>, vector<8x128xf32> -> vector<16x128xf32>
    %c0_10 = arith.constant 0 : index
    %c0_11 = arith.constant 0 : index
    %11 = vector.load %arg8[%c0_10, %c0_11] : memref<1x128xf32, #tpu.memory_space<vmem>>, vector<1x128xf32>
    %c0_12 = arith.constant 0 : index
    %c0_13 = arith.constant 0 : index
    %12 = vector.load %arg9[%c0_12, %c0_13] : memref<1x128xf32, #tpu.memory_space<vmem>>, vector<1x128xf32>
    %cst_14 = arith.constant dense<0.000000e+00> : vector<16xf32>
    %13 = vector.multi_reduction <add>, %10, %cst_14 [1] : vector<16x128xf32> to vector<16xf32>
    %14 = vector.shape_cast %13 : vector<16xf32> to vector<16x1xf32>
    %cst_15 = arith.constant 1.280000e+02 : f32
    %15 = vector.broadcast %cst_15 : f32 to vector<16x1xf32>
    %16 = arith.divf %14, %15 : vector<16x1xf32>
    %17 = vector.broadcast %16 : vector<16x1xf32> to vector<16x128xf32>
    %18 = arith.subf %10, %17 : vector<16x128xf32>
    %19 = arith.mulf %18, %18 : vector<16x128xf32>
    %cst_16 = arith.constant dense<0.000000e+00> : vector<16xf32>
    %20 = vector.multi_reduction <add>, %19, %cst_16 [1] : vector<16x128xf32> to vector<16xf32>
    %21 = vector.shape_cast %20 : vector<16xf32> to vector<16x1xf32>
    %cst_17 = arith.constant 1.280000e+02 : f32
    %22 = vector.broadcast %cst_17 : f32 to vector<16x1xf32>
    %23 = arith.divf %21, %22 : vector<16x1xf32>
    %24 = vector.broadcast %16 : vector<16x1xf32> to vector<16x128xf32>
    %25 = arith.subf %10, %24 : vector<16x128xf32>
    %cst_18 = arith.constant 9.99999974E-6 : f32
    %26 = vector.broadcast %cst_18 : f32 to vector<16x1xf32>
    %27 = arith.addf %23, %26 : vector<16x1xf32>
    %28 = math.rsqrt %27 : vector<16x1xf32>
    %29 = vector.broadcast %28 : vector<16x1xf32> to vector<16x128xf32>
    %30 = arith.mulf %25, %29 : vector<16x128xf32>
    %31 = vector.broadcast %11 : vector<1x128xf32> to vector<16x128xf32>
    %32 = arith.mulf %30, %31 : vector<16x128xf32>
    %33 = vector.broadcast %12 : vector<1x128xf32> to vector<16x128xf32>
    %34 = arith.addf %32, %33 : vector<16x128xf32>
    %35 = arith.truncf %34 : vector<16x128xf32> to vector<16x128xbf16>
    %c0_19 = arith.constant 0 : index
    %c0_20 = arith.constant 0 : index
    %36 = vector.load %arg6[%c0_19, %c0_20] : memref<128x384xbf16, #tpu.memory_space<vmem>>, vector<128x384xbf16>
    %cst_21 = arith.constant dense<0.000000e+00> : vector<16x384xf32>
    %37 = tpu.matmul %35, %36, %cst_21 {dimension_numbers = #tpu.dot_dimension_numbers<[1], [0], [0], [1], [0, 0, 1, 1], [], []>} : vector<16x128xbf16>, vector<128x384xbf16>, vector<16x384xf32> -> vector<16x384xf32>
    %38 = vector.extract_strided_slice %37 {offsets = [0, 0], sizes = [16, 128], strides = [1, 1]} : vector<16x384xf32> to vector<16x128xf32>
    %39 = vector.extract_strided_slice %37 {offsets = [0, 128], sizes = [16, 128], strides = [1, 1]} : vector<16x384xf32> to vector<16x128xf32>
    %40 = vector.extract_strided_slice %37 {offsets = [0, 256], sizes = [16, 128], strides = [1, 1]} : vector<16x384xf32> to vector<16x128xf32>
    %41 = arith.truncf %38 : vector<16x128xf32> to vector<16x128xbf16>
    %42 = arith.truncf %39 : vector<16x128xf32> to vector<16x128xbf16>
    %cst_22 = arith.constant dense<0.000000e+00> : vector<16x16xf32>
    %43 = tpu.matmul %41, %42, %cst_22 {dimension_numbers = #tpu.dot_dimension_numbers<[1], [1], [0], [0], [0, 0, 1, 0], [], []>} : vector<16x128xbf16>, vector<16x128xbf16>, vector<16x16xf32> -> vector<16x16xf32>
    %c0_23 = arith.constant 0 : index
    %c0_24 = arith.constant 0 : index
    %44 = vector.load %arg4[%c0_23, %c0_24] : memref<16x16xf32, #tpu.memory_space<vmem>>, vector<16x16xf32>
    %45 = arith.addf %43, %44 : vector<16x16xf32>
    %cst_25 = arith.constant dense<0xFF800000> : vector<16xf32>
    %46 = vector.multi_reduction <maximumf>, %45, %cst_25 [1] : vector<16x16xf32> to vector<16xf32>
    %47 = vector.shape_cast %46 : vector<16xf32> to vector<16x1xf32>
    %48 = vector.broadcast %47 : vector<16x1xf32> to vector<16x16xf32>
    %49 = arith.subf %45, %48 : vector<16x16xf32>
    %50 = math.exp %49 : vector<16x16xf32>
    %cst_26 = arith.constant dense<0.000000e+00> : vector<16xf32>
    %51 = vector.multi_reduction <add>, %50, %cst_26 [1] : vector<16x16xf32> to vector<16xf32>
    %52 = vector.shape_cast %51 : vector<16xf32> to vector<16x1xf32>
    %53 = tpu.reciprocal %52 {approx = true} : vector<16x1xf32> -> vector<16x1xf32>
    %54 = vector.broadcast %53 : vector<16x1xf32> to vector<16x16xf32>
    %55 = arith.mulf %50, %54 : vector<16x16xf32>
    %56 = arith.truncf %55 : vector<16x16xf32> to vector<16x16xbf16>
    %57 = arith.truncf %40 : vector<16x128xf32> to vector<16x128xbf16>
    %cst_27 = arith.constant dense<0.000000e+00> : vector<16x128xf32>
    %58 = tpu.matmul %56, %57, %cst_27 {dimension_numbers = #tpu.dot_dimension_numbers<[1], [0], [0], [1], [0, 0, 1, 1], [], []>} : vector<16x16xbf16>, vector<16x128xbf16>, vector<16x128xf32> -> vector<16x128xf32>
    %59 = arith.truncf %58 : vector<16x128xf32> to vector<16x128xbf16>
    %c0_28 = arith.constant 0 : index
    %c0_29 = arith.constant 0 : index
    %60 = vector.load %arg7[%c0_28, %c0_29] : memref<128x128xbf16, #tpu.memory_space<vmem>>, vector<128x128xbf16>
    %cst_30 = arith.constant dense<0.000000e+00> : vector<16x128xf32>
    %61 = tpu.matmul %59, %60, %cst_30 {dimension_numbers = #tpu.dot_dimension_numbers<[1], [0], [0], [1], [0, 0, 1, 1], [], []>} : vector<16x128xbf16>, vector<128x128xbf16>, vector<16x128xf32> -> vector<16x128xf32>
    %62 = arith.addf %10, %61 : vector<16x128xf32>
    %c0_31 = arith.constant 0 : index
    %c0_32 = arith.constant 0 : index
    %63 = vector.load %arg10[%c0_31, %c0_32] : memref<1x128xf32, #tpu.memory_space<vmem>>, vector<1x128xf32>
    %c0_33 = arith.constant 0 : index
    %c0_34 = arith.constant 0 : index
    %64 = vector.load %arg11[%c0_33, %c0_34] : memref<1x128xf32, #tpu.memory_space<vmem>>, vector<1x128xf32>
    %cst_35 = arith.constant dense<0.000000e+00> : vector<16xf32>
    %65 = vector.multi_reduction <add>, %62, %cst_35 [1] : vector<16x128xf32> to vector<16xf32>
    %66 = vector.shape_cast %65 : vector<16xf32> to vector<16x1xf32>
    %cst_36 = arith.constant 1.280000e+02 : f32
    %67 = vector.broadcast %cst_36 : f32 to vector<16x1xf32>
    %68 = arith.divf %66, %67 : vector<16x1xf32>
    %69 = vector.broadcast %68 : vector<16x1xf32> to vector<16x128xf32>
    %70 = arith.subf %62, %69 : vector<16x128xf32>
    %71 = arith.mulf %70, %70 : vector<16x128xf32>
    %cst_37 = arith.constant dense<0.000000e+00> : vector<16xf32>
    %72 = vector.multi_reduction <add>, %71, %cst_37 [1] : vector<16x128xf32> to vector<16xf32>
    %73 = vector.shape_cast %72 : vector<16xf32> to vector<16x1xf32>
    %cst_38 = arith.constant 1.280000e+02 : f32
    %74 = vector.broadcast %cst_38 : f32 to vector<16x1xf32>
    %75 = arith.divf %73, %74 : vector<16x1xf32>
    %76 = vector.broadcast %68 : vector<16x1xf32> to vector<16x128xf32>
    %77 = arith.subf %62, %76 : vector<16x128xf32>
    %cst_39 = arith.constant 9.99999974E-6 : f32
    %78 = vector.broadcast %cst_39 : f32 to vector<16x1xf32>
    %79 = arith.addf %75, %78 : vector<16x1xf32>
    %80 = math.rsqrt %79 : vector<16x1xf32>
    %81 = vector.broadcast %80 : vector<16x1xf32> to vector<16x128xf32>
    %82 = arith.mulf %77, %81 : vector<16x128xf32>
    %83 = vector.broadcast %63 : vector<1x128xf32> to vector<16x128xf32>
    %84 = arith.mulf %82, %83 : vector<16x128xf32>
    %85 = vector.broadcast %64 : vector<1x128xf32> to vector<16x128xf32>
    %86 = arith.addf %84, %85 : vector<16x128xf32>
    %87 = arith.truncf %86 : vector<16x128xf32> to vector<16x128xbf16>
    %c0_40 = arith.constant 0 : index
    %c0_41 = arith.constant 0 : index
    %88 = vector.load %arg12[%c0_40, %c0_41] : memref<128x512xbf16, #tpu.memory_space<vmem>>, vector<128x512xbf16>
    %cst_42 = arith.constant dense<0.000000e+00> : vector<16x512xf32>
    %89 = tpu.matmul %87, %88, %cst_42 {dimension_numbers = #tpu.dot_dimension_numbers<[1], [0], [0], [1], [0, 0, 1, 1], [], []>} : vector<16x128xbf16>, vector<128x512xbf16>, vector<16x512xf32> -> vector<16x512xf32>
    %c0_43 = arith.constant 0 : index
    %c0_44 = arith.constant 0 : index
    %90 = vector.load %arg13[%c0_43, %c0_44] : memref<1x512xf32, #tpu.memory_space<vmem>>, vector<1x512xf32>
    %91 = vector.broadcast %90 : vector<1x512xf32> to vector<16x512xf32>
    %92 = arith.addf %89, %91 : vector<16x512xf32>
    %93 = arith.mulf %92, %92 : vector<16x512xf32>
    %94 = arith.mulf %92, %93 : vector<16x512xf32>
    %cst_45 = arith.constant 4.471500e-02 : f32
    %95 = vector.broadcast %cst_45 : f32 to vector<16x512xf32>
    %96 = arith.mulf %95, %94 : vector<16x512xf32>
    %97 = arith.addf %92, %96 : vector<16x512xf32>
    %cst_46 = arith.constant 0.797884583 : f32
    %98 = vector.broadcast %cst_46 : f32 to vector<16x512xf32>
    %99 = arith.mulf %98, %97 : vector<16x512xf32>
    %100 = math.tanh %99 : vector<16x512xf32>
    %cst_47 = arith.constant 1.000000e+00 : f32
    %101 = vector.broadcast %cst_47 : f32 to vector<16x512xf32>
    %102 = arith.addf %101, %100 : vector<16x512xf32>
    %cst_48 = arith.constant 5.000000e-01 : f32
    %103 = vector.broadcast %cst_48 : f32 to vector<16x512xf32>
    %104 = arith.mulf %103, %102 : vector<16x512xf32>
    %105 = arith.mulf %92, %104 : vector<16x512xf32>
    %106 = arith.truncf %105 : vector<16x512xf32> to vector<16x512xbf16>
    %c0_49 = arith.constant 0 : index
    %c0_50 = arith.constant 0 : index
    %107 = vector.load %arg14[%c0_49, %c0_50] : memref<512x128xbf16, #tpu.memory_space<vmem>>, vector<512x128xbf16>
    %cst_51 = arith.constant dense<0.000000e+00> : vector<16x128xf32>
    %108 = tpu.matmul %106, %107, %cst_51 {dimension_numbers = #tpu.dot_dimension_numbers<[1], [0], [0], [1], [0, 0, 1, 1], [], []>} : vector<16x512xbf16>, vector<512x128xbf16>, vector<16x128xf32> -> vector<16x128xf32>
    %109 = arith.addf %62, %108 : vector<16x128xf32>
    %c0_52 = arith.constant 0 : index
    %c0_53 = arith.constant 0 : index
    %110 = vector.load %arg15[%c0_52, %c0_53] : memref<1x128xf32, #tpu.memory_space<vmem>>, vector<1x128xf32>
    %111 = vector.broadcast %110 : vector<1x128xf32> to vector<16x128xf32>
    %112 = arith.addf %109, %111 : vector<16x128xf32>
    %c0_54 = arith.constant 0 : index
    %c0_55 = arith.constant 0 : index
    %c0_56 = arith.constant 0 : index
    %113 = vector.load %arg16[%c0_54, %c0_55, %c0_56] : memref<1x16x128xf32, #tpu.memory_space<vmem>>, vector<1x16x128xf32>
    %114 = vector.shape_cast %113 : vector<1x16x128xf32> to vector<16x128xf32>
    %115 = vector.shape_cast %112 : vector<16x128xf32> to vector<1x16x128xf32>
    tpu.vector_store %arg16[%c0_54, %c0_55, %c0_56], %115 {strides = array<i32>} : memref<1x16x128xf32, #tpu.memory_space<vmem>>, vector<1x16x128xf32>,
    return
  }
  func.func @transform_0(%arg0: i32) -> (i32, i32, i32) {
    %c0_i32 = arith.constant 0 : i32
    %c0_i32_0 = arith.constant 0 : i32
    %c0_i32_1 = arith.constant 0 : i32
    return %arg0, %c0_i32, %c0_i32_0 : i32, i32, i32
  }
  func.func @transform_1(%arg0: i32) -> (i32, i32, i32) {
    %c0_i32 = arith.constant 0 : i32
    %c0_i32_0 = arith.constant 0 : i32
    %c0_i32_1 = arith.constant 0 : i32
    return %arg0, %c0_i32, %c0_i32_0 : i32, i32, i32
  }
  func.func @transform_2(%arg0: i32) -> (i32, i32, i32) {
    %c0_i32 = arith.constant 0 : i32
    %c0_i32_0 = arith.constant 0 : i32
    %c0_i32_1 = arith.constant 0 : i32
    return %arg0, %c0_i32, %c0_i32_0 : i32, i32, i32
  }
  func.func @transform_3(%arg0: i32) -> (i32, i32) {
    %c0_i32 = arith.constant 0 : i32
    %c0_i32_0 = arith.constant 0 : i32
    %c0_i32_1 = arith.constant 0 : i32
    return %c0_i32, %c0_i32_0 : i32, i32
  }
  func.func @transform_4(%arg0: i32) -> (i32, i32) {
    %c0_i32 = arith.constant 0 : i32
    %c0_i32_0 = arith.constant 0 : i32
    %c0_i32_1 = arith.constant 0 : i32
    return %c0_i32, %c0_i32_0 : i32, i32
  }
  func.func @transform_5(%arg0: i32) -> (i32, i32) {
    %c0_i32 = arith.constant 0 : i32
    %c0_i32_0 = arith.constant 0 : i32
    %c0_i32_1 = arith.constant 0 : i32
    return %c0_i32, %c0_i32_0 : i32, i32
  }
  func.func @transform_6(%arg0: i32) -> (i32, i32) {
    %c0_i32 = arith.constant 0 : i32
    %c0_i32_0 = arith.constant 0 : i32
    %c0_i32_1 = arith.constant 0 : i32
    return %c0_i32, %c0_i32_0 : i32, i32
  }
  func.func @transform_7(%arg0: i32) -> (i32, i32) {
    %c0_i32 = arith.constant 0 : i32
    %c0_i32_0 = arith.constant 0 : i32
    %c0_i32_1 = arith.constant 0 : i32
    return %c0_i32, %c0_i32_0 : i32, i32
  }
  func.func @transform_8(%arg0: i32) -> (i32, i32) {
    %c0_i32 = arith.constant 0 : i32
    %c0_i32_0 = arith.constant 0 : i32
    %c0_i32_1 = arith.constant 0 : i32
    return %c0_i32, %c0_i32_0 : i32, i32
  }
  func.func @transform_9(%arg0: i32) -> (i32, i32) {
    %c0_i32 = arith.constant 0 : i32
    %c0_i32_0 = arith.constant 0 : i32
    %c0_i32_1 = arith.constant 0 : i32
    return %c0_i32, %c0_i32_0 : i32, i32
  }
  func.func @transform_10(%arg0: i32) -> (i32, i32) {
    %c0_i32 = arith.constant 0 : i32
    %c0_i32_0 = arith.constant 0 : i32
    %c0_i32_1 = arith.constant 0 : i32
    return %c0_i32, %c0_i32_0 : i32, i32
  }
  func.func @transform_11(%arg0: i32) -> (i32, i32) {
    %c0_i32 = arith.constant 0 : i32
    %c0_i32_0 = arith.constant 0 : i32
    %c0_i32_1 = arith.constant 0 : i32
    return %c0_i32, %c0_i32_0 : i32, i32
  }
  func.func @transform_12(%arg0: i32) -> (i32, i32) {
    %c0_i32 = arith.constant 0 : i32
    %c0_i32_0 = arith.constant 0 : i32
    %c0_i32_1 = arith.constant 0 : i32
    return %c0_i32, %c0_i32_0 : i32, i32
  }
  func.func @transform_13(%arg0: i32) -> (i32, i32) {
    %c0_i32 = arith.constant 0 : i32
    %c0_i32_0 = arith.constant 0 : i32
    %c0_i32_1 = arith.constant 0 : i32
    return %c0_i32, %c0_i32_0 : i32, i32
  }
  func.func @transform_14(%arg0: i32) -> (i32, i32) {
    %c0_i32 = arith.constant 0 : i32
    %c0_i32_0 = arith.constant 0 : i32
    %c0_i32_1 = arith.constant 0 : i32
    return %c0_i32, %c0_i32_0 : i32, i32
  }
  func.func @transform_15(%arg0: i32) -> (i32, i32, i32) {
    %c0_i32 = arith.constant 0 : i32
    %c0_i32_0 = arith.constant 0 : i32
    %c0_i32_1 = arith.constant 0 : i32
    return %arg0, %c0_i32, %c0_i32_0 : i32, i32, i32
  }
}

</mosaic_0001>

<bundles_post_ra>
// kernel: e2e_objnav_forward.2
= control target key start
LH: loop header
LB: loop body
LE: loop exit
PB: predicated region body
PF: predicated region fallthrough
CT: control target
= control target key end

     0   :  { %s845_s21 = smov 0   ;;  %s1071_s0 = inlined_call_operand.vmem [shape: f32[256,48], index: 0, kind: input, shape index: {}]   ;;  %s1072_s1 = inlined_call_operand.vmem [shape: f32[8,128], index: 1, kind: input, shape index: {}]   ;;  %s1073_s2 = inlined_call_operand.vmem [shape: bf16[48,128], index: 2, kind: input, shape index: {}]   ;;  %s1074_s3 = inlined_call_operand.vmem [shape: f32[1,128], index: 3, kind: input, shape index: {}]   ;;  %s1075_s4 = inlined_call_operand.vmem [shape: bf16[128,32], index: 4, kind: input, shape index: {}]   ;;  %s1076_s5 = inlined_call_operand.vmem [shape: f32[1,32], index: 5, kind: input, shape index: {}]   ;;  %s1077_s6 = inlined_call_operand.vmem [shape: f32[16,32], index: 6, kind: output, shape index: {}]  }
   0x1 LB: > { %s851_s22 = sadd.s32 4294967295, %s808_s21   ;;  %p685_p0 = scmp.ge.s32.totalorder %s808_s21, 1  ;;  %s808_s21 = sphi %s845_s21, %s16_s21  }
   0x2   : > { %p213_p1 = scmp.lt.s32.totalorder %s808_s21, 3 }
   0x4   : > { %p214_p2 = pnand %p685_p0, %p213_p1 }
   0x5   : > { %s686_s25 = sshll.u32 (!%p214_p2), %s851_s22, 4  ;;  %p248_p4 = scmp.lt.s32.totalorder (!%p214_p2), %s851_s22, 1 }
   0x6   : > { %217 = sbr.rel (%p214_p2) target bundleno = 519 (0x207), region = 44  ;;  %p243_p3 = scmp.lt.s32.totalorder (!%p214_p2), %s686_s25, 31 }
   0xb   : > { %v745_v0 = vld [vmem:[%s1073_s2 + $0x10] sm:$0xff]  ;;  %v744_v1 = vld [vmem:[%s1073_s2 + $0x8] sm:$0xff]  ;;  %s1079_s25 = smov (!%p243_p3, %s686_s25), 31  ;;  %v743_v2 = vld [vmem:[%s1073_s2] sm:$0xff]  ;;  %vm305_vm0 = vcmask 392192   ;;  %s1081_s22 = smov (!%p248_p4, %s851_s22), 1 }
   0xc   : > { %335 = vmatpush.bf16.msra.mxu0 %v745_v0  ;;  %755 = vmatpush.bf16.msra.mxu3 %v745_v0  ;;  %s687_s28 = sshll.u32 %s1079_s25, 3  ;;  %v901_v38 = vld [vmem:[%s1074_s3] ss:$0 sm:$0xff]  ;;  %s688_s8 = sshll.u32 %s1081_s22, 3  ;;  %vm626_vm1 = vcmask 261120  }
   0xd   : > { %754 = vmatpush.bf16.msra.mxu1 %v745_v0  ;;  %s868_s9 = scalar_lea.vmem %s1071_s0, %s687_s28  ;;  %s251_s13 = scalar_lea.vmem %s1077_s6, %s688_s8 }
   0xe   : > { %v253_v3 = vld [vmem:[%s868_s9] sm:$0xff]  ;;  %v254_v4 = vld [vmem:[%s868_s9 + $0x8] sm:$0xff]  ;;  %v263_v5 = vld [vmem:[%s868_s9 + $0x50] sm:$0xff] }
   0xf   : > { %v264_v6 = vld [vmem:[%s868_s9 + $0x58] sm:$0xff]  ;;  %v259_v7 = vld [vmem:[%s868_s9 + $0x30] sm:$0xff]  ;;  %v269_v9 = vpack.c.bf16 %v254_v4, %v253_v3  ;;  %v265_v14 = vld [vmem:[%s868_s9 + $0x60] sm:$0xff] }
  0x10   : > { %336 = vmatpush.bf16.msra.mxu0 %v744_v1  ;;  %757 = vmatpush.bf16.msra.mxu3 %v744_v1  ;;  %v260_v8 = vld [vmem:[%s868_s9 + $0x38] sm:$0xff]  ;;  %v274_v10 = vpack.c.bf16 %v264_v6, %v263_v5  ;;  %v255_v12 = vld [vmem:[%s868_s9 + $0x10] sm:$0xff]  ;;  %v266_v15 = vld [vmem:[%s868_s9 + $0x68] sm:$0xff] }
  0x11   : > { %756 = vmatpush.bf16.msra.mxu1 %v744_v1  ;;  %v272_v11 = vpack.c.bf16 %v260_v8, %v259_v7  ;;  %v256_v13 = vld [vmem:[%s868_s9 + $0x18] sm:$0xff]  ;;  %v261_v16 = vld [vmem:[%s868_s9 + $0x40] sm:$0xff]  ;;  %v262_v17 = vld [vmem:[%s868_s9 + $0x48] sm:$0xff]  ;;  %v275_v19 = vpack.c.bf16 %v266_v15, %v265_v14 }
  0x12   : > { %v270_v18 = vpack.c.bf16 %v256_v13, %v255_v12  ;;  %v273_v20 = vpack.c.bf16 %v262_v17, %v261_v16  ;;  %v257_v21 = vld [vmem:[%s868_s9 + $0x20] sm:$0xff]  ;;  %v258_v22 = vld [vmem:[%s868_s9 + $0x28] sm:$0xff]  ;;  %v267_v23 = vld [vmem:[%s868_s9 + $0x70] sm:$0xff] }
  0x13   : > { %v268_v24 = vld [vmem:[%s868_s9 + $0x78] sm:$0xff]  ;;  %v271_v25 = vpack.c.bf16 %v258_v22, %v257_v21 }
  0x14   : > { %337 = vmatpush.bf16.msra.mxu0 %v743_v2  ;;  %759 = vmatpush.bf16.msra.mxu3 %v743_v2  ;;  %v276_v26 = vpack.c.bf16 %v268_v24, %v267_v23 }
  0x15   : > { %758 = vmatpush.bf16.msra.mxu1 %v743_v2 }
  0x17   : > { %701 = vmatmul.msk.bf16.vlgmr.msra.gmra.mxu0 %vm305_vm0, %v269_v9  ;;  %706 = vmatmul.msk.bf16.vlgmr.msra.gmra.mxu3 %vm305_vm0, %v274_v10 }
  0x18   : > { %704 = vmatmul.msk.bf16.vlgmr.msra.gmra.mxu1 %vm305_vm0, %v272_v11 }
  0x27   : > { %702 = vmatmul.msk.bf16.gmra.mxu0 %vm305_vm0, %v270_v18  ;;  %707 = vmatmul.msk.bf16.gmra.mxu3 %vm305_vm0, %v275_v19 }
  0x28   : > { %705 = vmatmul.msk.bf16.gmra.mxu1 %vm305_vm0, %v273_v20 }
  0x37   : > { %703 = vmatmul.msk.bf16.gmra.mxu0 %vm305_vm0, %v271_v25  ;;  %708 = vmatmul.msk.bf16.gmra.mxu3 %vm305_vm0, %v276_v26 }
  0x94   : > { %v894_v27 = vpop.f32.mrf.mxu0 }
  0x95   : > { %v354_v29 = vpop.f32.mrf.mxu1 }
  0x96   : > { %v944_v62 = vadd.f32 %v901_v38, %v354_v29 }
  0x98   : > { %v385_v12 = vmul.f32 %v944_v62, %v944_v62 }
  0x9a   : > { %v364_v28 = vpop.f32.mrf.mxu3  ;;  %v401_v26 = vmul.f32 %v385_v12, %v944_v62 }
  0x9b   : > { %v915_v44 = vadd.f32 %v901_v38, %v364_v28 }
  0x9c   : > { %v896_v30 = vpop.f32.mrf.mxu0 }
  0x9d   : > { %v356_v33 = vpop.f32.mrf.mxu1  ;;  %v389_v53 = vmul.f32 %v915_v44, %v915_v44 }
  0x9e   : > { %v938_v57 = vadd.f32 %v901_v38, %v356_v33 }
  0x9f   : > { %v405_v63 = vmul.f32 %v389_v53, %v915_v44 }
  0xa0   : > { %v386_v6 = vmul.f32 %v938_v57, %v938_v57 }
  0xa1   : > { %v421_v14 = vmul.f32 0.044715, %v405_v63 }
  0xa2   : > { %v366_v31 = vpop.f32.mrf.mxu3  ;;  %v402_v19 = vmul.f32 %v386_v6, %v938_v57 }
  0xa3   : > { %v910_v41 = vadd.f32 %v901_v38, %v366_v31  ;;  %v437_v31 = vadd.f32 %v421_v14, %v915_v44 }
  0xa4   : > { %v344_v32 = vpop.f32.mrf.mxu0 }
  0xa5   : > { %v359_v36 = vpop.f32.mrf.mxu1  ;;  %v390_v49 = vmul.f32 %v910_v41, %v910_v41  ;;  %v979_v28 = vadd.f32 %v901_v38, %v344_v32  ;;  %v418_v32 = vmul.f32 0.044715, %v402_v19 }
  0xa6   : > { %v934_v55 = vadd.f32 %v901_v38, %v359_v36  ;;  %v987_v36 = vadd.f32 %v901_v38, %v896_v30 }
  0xa7   : > { %v406_v58 = vmul.f32 %v390_v49, %v910_v41  ;;  %v453_v49 = vmul.f32 0.7978846, %v437_v31  ;;  %v381_v30 = vmul.f32 %v979_v28, %v979_v28 }
  0xa8   : > { %v387_v3 = vmul.f32 %v934_v55, %v934_v55 }
  0xa9   : > { %v422_v7 = vmul.f32 0.044715, %v406_v58 }
  0xaa   : > { %v369_v34 = vpop.f32.mrf.mxu3  ;;  %v403_v15 = vmul.f32 %v387_v3, %v934_v55 }
  0xab   : > { %v907_v40 = vadd.f32 %v901_v38, %v369_v34  ;;  %v438_v21 = vadd.f32 %v422_v7, %v910_v41 }
  0xac   : > { %v346_v35 = vpop.f32.mrf.mxu0 }
  0xad   : > { %v391_v45 = vmul.f32 %v907_v40, %v907_v40  ;;  %v361_v46 = vpop.f32.mrf.mxu1  ;;  %v972_v20 = vadd.f32 %v901_v38, %v346_v35  ;;  %v419_v35 = vmul.f32 0.044715, %v403_v15 }
  0xae   : > { %v925_v50 = vadd.f32 %v901_v38, %v361_v46 }
  0xaf   : > { %v407_v54 = vmul.f32 %v391_v45, %v907_v40  ;;  %v435_v53 = vadd.f32 %v419_v35, %v934_v55 }
  0xb0   : > { %v388_v59 = vmul.f32 %v925_v50, %v925_v50 }
  0xb1   : > { %v423_v2 = vmul.f32 0.044715, %v407_v54  ;;  %v380_v54 = vmul.f32 %v987_v36, %v987_v36 }
  0xb2   : > { %v371_v37 = vpop.f32.mrf.mxu3  ;;  %v404_v8 = vmul.f32 %v388_v59, %v925_v50 }
  0xb3   : > { %v904_v39 = vadd.f32 %v901_v38, %v371_v37  ;;  %v439_v13 = vadd.f32 %v423_v2, %v907_v40  ;;  %v382_v37 = vmul.f32 %v972_v20, %v972_v20 }
  0xb4   : > { %v349_v42 = vpop.f32.mrf.mxu0  ;;  %v420_v25 = vmul.f32 0.044715, %v404_v8 }
  0xb5   : > { %v392_v43 = vmul.f32 %v904_v39, %v904_v39  ;;  %v967_v16 = vadd.f32 %v901_v38, %v349_v42  ;;  %v455_v29 = vmul.f32 0.7978846, %v439_v13  ;;  %v454_v42 = vmul.f32 0.7978846, %v438_v21 }
  0xb6   : > { %v436_v46 = vadd.f32 %v420_v25, %v925_v50 }
  0xb7   : > { %v408_v51 = vmul.f32 %v392_v43, %v904_v39  ;;  %v383_v33 = vmul.f32 %v967_v16, %v967_v16 }
  0xb9   : > { %v424_v61 = vmul.f32 0.044715, %v408_v51  ;;  %v417_v51 = vmul.f32 0.044715, %v401_v26 }
  0xba   : > { %v374_v47 = vpop.f32.mrf.mxu3 }
  0xbb   : > { %v920_v48 = vadd.f32 %v901_v38, %v374_v47  ;;  %v440_v11 = vadd.f32 %v424_v61, %v904_v39  ;;  %v995_v47 = vadd.f32 %v901_v38, %v894_v27  ;;  %v398_v27 = vmul.f32 %v382_v37, %v972_v20 }
  0xbc   : > { %v351_v0 = vpop.f32.mrf.mxu0  ;;  %v433_v61 = vadd.f32 %v417_v51, %v944_v62 }
  0xbd   : > { %v393_v52 = vmul.f32 %v920_v48, %v920_v48  ;;  %v957_v9 = vadd.f32 %v901_v38, %v351_v0  ;;  %v456_v24 = vmul.f32 0.7978846, %v440_v11  ;;  %v397_v0 = vmul.f32 %v381_v30, %v979_v28 }
  0xbe   : > { %v414_v11 = vmul.f32 0.044715, %v398_v27 }
  0xbf   : > { %v409_v56 = vmul.f32 %v393_v52, %v920_v48  ;;  %v384_v22 = vmul.f32 %v957_v9, %v957_v9  ;;  %v399_v52 = vmul.f32 %v383_v33, %v967_v16  ;;  %v413_v19 = vmul.f32 0.044715, %v397_v0 }
  0xc0   : > { %v430_v26 = vadd.f32 %v414_v11, %v972_v20 }
  0xc1   : > { %v425_v60 = vmul.f32 0.044715, %v409_v56  ;;  %v400_v43 = vmul.f32 %v384_v22, %v957_v9  ;;  %v434_v56 = vadd.f32 %v418_v32, %v938_v57  ;;  %v415_v2 = vmul.f32 0.044715, %v399_v52  ;;  %v752_v52 = vld [vmem:[%s1075_s4 + $0x30] sm:$0xff] }
  0xc2   : > { %v376_v1 = vpop.f32.mrf.mxu3 }
  0xc3   : > { %v950_v4 = vadd.f32 %v901_v38, %v376_v1  ;;  %v441_v5 = vadd.f32 %v425_v60, %v920_v48  ;;  %v452_v38 = vmul.f32 0.7978846, %v436_v46  ;;  %v416_v59 = vmul.f32 0.044715, %v400_v43  ;;  %v753_v43 = vld [vmem:[%s1075_s4 + $0x38] sm:$0xff] }
  0xc4   : > { %v379_v60 = vmul.f32 %v995_v47, %v995_v47  ;;  %v451_v1 = vmul.f32 0.7978846, %v435_v53  ;;  %v450_v8 = vmul.f32 0.7978846, %v434_v56  ;;  %613 = vmatpush.bf16.msra.mxu2 %v753_v43 }
  0xc5   : > { %v394_v10 = vmul.f32 %v950_v4, %v950_v4  ;;  %v457_v18 = vmul.f32 0.7978846, %v441_v5  ;;  %v396_v5 = vmul.f32 %v380_v54, %v987_v36 }
  0xc6   : > { %v395_v12 = vmul.f32 %v379_v60, %v995_v47 }
  0xc7   : > { %v410_v17 = vmul.f32 %v394_v10, %v950_v4  ;;  %770 = vtanh.f32 %v457_v18  ;;  %v432_v10 = vadd.f32 %v416_v59, %v957_v9  ;;  %v431_v18 = vadd.f32 %v415_v2, %v967_v16 }
  0xc8   : > { %772 = vtanh.f32 %v456_v24  ;;  %v411_v32 = vmul.f32 0.044715, %v395_v12  ;;  %614 = vmatpush.bf16.msra.mxu2 %v752_v52 }
  0xc9   : > { %v426_v23 = vmul.f32 0.044715, %v410_v17  ;;  %774 = vtanh.f32 %v455_v29  ;;  %v449_v17 = vmul.f32 0.7978846, %v433_v61  ;;  %v448_v25 = vmul.f32 0.7978846, %v432_v10 }
  0xca   : > { %v412_v29 = vmul.f32 0.044715, %v396_v5  ;;  %v447_v37 = vmul.f32 0.7978846, %v431_v18  ;;  %v427_v27 = vadd.f32 %v411_v32, %v995_v47  ;;  %v750_v10 = vld [vmem:[%s1075_s4 + $0x20] sm:$0xff]  ;;  %v749_v18 = vld [vmem:[%s1075_s4 + $0x18] sm:$0xff] }
  0xcb   : > { %v442_v34 = vadd.f32 %v426_v23, %v950_v4 }
  0xcc   : > { %v428_v30 = vadd.f32 %v412_v29, %v987_v36  ;;  %v443_v5 = vmul.f32 0.7978846, %v427_v27 }
  0xcd   : > { %v458_v45 = vmul.f32 0.7978846, %v442_v34  ;;  %v771_v58 = vpop.eup %770 }
  0xce   : > { %v773_v63 = vpop.eup %772  ;;  %v489_v6 = vadd.f32 1.0, %v771_v58 }
  0xcf   : > { %776 = vtanh.f32 %v458_v45  ;;  %v775_v3 = vpop.eup %774  ;;  %v488_v14 = vadd.f32 1.0, %v773_v63  ;;  %v444_v63 = vmul.f32 0.7978846, %v428_v30 }
  0xd0   : > { %778 = vtanh.f32 %v454_v42  ;;  %v505_v22 = vmul.f32 0.5, %v489_v6  ;;  %v487_v23 = vadd.f32 1.0, %v775_v3  ;;  %v429_v42 = vadd.f32 %v413_v19, %v979_v28 }
  0xd1   : > { %780 = vtanh.f32 %v453_v49  ;;  %v504_v33 = vmul.f32 0.5, %v488_v14 }
  0xd2   : > { %782 = vtanh.f32 %v452_v38  ;;  %v521_v45 = vmul.f32 %v505_v22, %v920_v48  ;;  %v503_v46 = vmul.f32 0.5, %v487_v23  ;;  %v445_v48 = vmul.f32 0.7978846, %v429_v42 }
  0xd3   : > { %784 = vtanh.f32 %v451_v1  ;;  %v520_v53 = vmul.f32 %v504_v33, %v904_v39  ;;  %v751_v39 = vld [vmem:[%s1075_s4 + $0x28] sm:$0xff] }
  0xd4   : > { %786 = vtanh.f32 %v450_v8  ;;  %v519_v38 = vmul.f32 %v503_v46, %v907_v40  ;;  %615 = vmatpush.bf16.msra.mxu2 %v751_v39 }
  0xd5   : > { %v777_v7 = vpop.eup %776  ;;  %788 = vtanh.f32 %v449_v17 }
  0xd6   : > { %v490_v13 = vadd.f32 1.0, %v777_v7  ;;  %v779_v15 = vpop.eup %778  ;;  %790 = vtanh.f32 %v448_v25 }
  0xd7   : > { %v781_v24 = vpop.eup %780  ;;  %v486_v34 = vadd.f32 1.0, %v779_v15  ;;  %792 = vtanh.f32 %v447_v37 }
  0xd8   : > { %v506_v21 = vmul.f32 0.5, %v490_v13  ;;  %v783_v35 = vpop.eup %782  ;;  %v485_v49 = vadd.f32 1.0, %v781_v24  ;;  %616 = vmatpush.bf16.msra.mxu2 %v750_v10 }
  0xd9   : > { %v785_v51 = vpop.eup %784  ;;  %v502_v54 = vmul.f32 0.5, %v486_v34  ;;  %v484_v56 = vadd.f32 1.0, %v783_v35 }
  0xda   : > { %v522_v31 = vmul.f32 %v506_v21, %v950_v4  ;;  %v446_v4 = vmul.f32 0.7978846, %v430_v26  ;;  %v787_v58 = vpop.eup %786  ;;  %v501_v59 = vmul.f32 0.5, %v485_v49  ;;  %v483_v60 = vadd.f32 1.0, %v785_v51  ;;  %v748_v26 = vld [vmem:[%s1075_s4 + $0x10] sm:$0xff] }
  0xdb   : > { %v789_v61 = vpop.eup %788  ;;  %v518_v0 = vmul.f32 %v502_v54, %v910_v41  ;;  %v500_v1 = vmul.f32 0.5, %v484_v56  ;;  %v482_v2 = vadd.f32 1.0, %v787_v58 }
  0xdc   : > { %524 = vmatpush.msrb.mxu1 %v522_v31  ;;  %794 = vtanh.f32 %v446_v4  ;;  %v791_v3 = vpop.eup %790  ;;  %v517_v40 = vmul.f32 %v501_v59, %v915_v44  ;;  %v499_v6 = vmul.f32 0.5, %v483_v60  ;;  %v481_v7 = vadd.f32 1.0, %v789_v61  ;;  %617 = vmatpush.bf16.msra.mxu2 %v749_v18 }
  0xdd   : > { %796 = vtanh.f32 %v445_v48  ;;  %v793_v8 = vpop.eup %792  ;;  %v516_v41 = vmul.f32 %v500_v1, %v925_v50  ;;  %v498_v11 = vmul.f32 0.5, %v482_v2  ;;  %v480_v12 = vadd.f32 1.0, %v791_v3 }
  0xde   : > { %525 = vmatpush.msrb.mxu1 %v521_v45  ;;  %798 = vtanh.f32 %v444_v63  ;;  %v515_v14 = vmul.f32 %v499_v6, %v934_v55  ;;  %v497_v44 = vmul.f32 0.5, %v481_v7  ;;  %v479_v15 = vadd.f32 1.0, %v793_v8  ;;  %v523_v45 = vld [vmem:[%s1072_s1] sm:$0xff] }
  0xdf   : > { %800 = vtanh.f32 %v443_v5  ;;  %v514_v19 = vmul.f32 %v498_v11, %v938_v57  ;;  %v496_v21 = vmul.f32 0.5, %v480_v12 }
  0xe0   : > { %526 = vmatpush.msrb.mxu1 %v520_v53  ;;  %v513_v23 = vmul.f32 %v497_v44, %v944_v62  ;;  %v495_v24 = vmul.f32 0.5, %v479_v15  ;;  %618 = vmatpush.bf16.msra.mxu2 %v748_v26  ;;  %v747_v62 = vld [vmem:[%s1075_s4 + $0x8] sm:$0xff] }
  0xe1   : > { %v512_v29 = vmul.f32 %v496_v21, %v957_v9 }
  0xe2   : > { %527 = vmatpush.msrb.mxu1 %v519_v38  ;;  %v795_v13 = vpop.eup %794  ;;  %v511_v57 = vmul.f32 %v495_v24, %v967_v16 }
  0xe3   : > { %v797_v17 = vpop.eup %796  ;;  %v478_v50 = vadd.f32 1.0, %v795_v13 }
  0xe4   : > { %528 = vmatpush.msrb.mxu1 %v518_v0  ;;  %v799_v22 = vpop.eup %798  ;;  %v477_v25 = vadd.f32 1.0, %v797_v17  ;;  %619 = vmatpush.bf16.msra.mxu2 %v747_v62 }
  0xe5   : > { %v801_v55 = vpop.eup %800  ;;  %v494_v31 = vmul.f32 0.5, %v478_v50  ;;  %v476_v33 = vadd.f32 1.0, %v799_v22 }
  0xe6   : > { %529 = vmatpush.msrb.mxu1 %v517_v40  ;;  %v493_v34 = vmul.f32 0.5, %v477_v25  ;;  %v475_v35 = vadd.f32 1.0, %v801_v55 }
  0xe7   : > { %v510_v37 = vmul.f32 %v494_v31, %v972_v20  ;;  %v492_v42 = vmul.f32 0.5, %v476_v33  ;;  %v746_v20 = vld [vmem:[%s1075_s4] sm:$0xff] }
  0xe8   : > { %530 = vmatpush.msrb.mxu1 %v516_v41  ;;  %v509_v9 = vmul.f32 %v493_v34, %v979_v28  ;;  %v491_v32 = vmul.f32 0.5, %v475_v35  ;;  %620 = vmatpush.bf16.msra.mxu2 %v746_v20 }
  0xe9   : > { %v508_v16 = vmul.f32 %v492_v42, %v987_v36  ;;  %v769_v36 = vld [vmem:[%s1076_s5] ss:$0 sm:$0xff] }
  0xea   : > { %531 = vmatpush.msrb.mxu1 %v515_v14  ;;  %v507_v43 = vmul.f32 %v491_v32, %v995_v47 }
  0xec   : > { %532 = vmatpush.msrb.mxu1 %v514_v19 }
  0xee   : > { %533 = vmatpush.msrb.mxu1 %v513_v23 }
  0xf0   : > { %534 = vmatpush.msrb.mxu1 %v512_v29 }
  0xf2   : > { %535 = vmatpush.msrb.mxu1 %v511_v57 }
  0xf4   : > { %536 = vmatpush.msrb.mxu1 %v510_v37 }
  0xf6   : > { %537 = vmatpush.msrb.mxu1 %v509_v9 }
  0xf8   : > { %538 = vmatpush.msrb.mxu1 %v508_v16 }
  0xfa   : > { %539 = vmatpush.msrb.mxu1 %v507_v43 }
  0xfb   : > { %540 = vmatmul.f32.vlgmr.msrb.gmra.mxu1 %v523_v45 }
 0x178   : > { %v541_v28 = vpop.f32.mrf.mxu1 }
 0x179   : > { %v544_v46 = vpack.c.bf16 %v541_v28, %v541_v28 }
 0x17b   : > { %621 = vmatmul.bf16.vlgmr.msra.gmra.mxu2 %v544_v46 }
 0x1fe   : > { %v622_v47 = vpop.f32.mrf.mxu2 }
 0x1ff   : > { %v623_v49 = vadd.f32 %v769_v36, %v622_v47 }
 0x201   : > { %627 = vst.msk [vmem:[%s251_s13] sm:$0xff] %vm626_vm1, %v623_v49 }
 0x206   : > { %v624_v51 = vpop.f32.mrf.mxu2 }
 0x207 PF: > { %s16_s21 = sadd.s32 1, %s808_s21  }
 0x208   : > { %p13_p5 = scmp.ge.s32.totalorder %s16_s21, 4  }
 0x20a   :  { %15 = sbr.rel (!%p13_p5) target bundleno = 1 (0x1), region = 74 }

// kernel: e2e_objnav_forward.3
= control target key start
LH: loop header
LB: loop body
LE: loop exit
PB: predicated region body
PF: predicated region fallthrough
CT: control target
= control target key end

     0   :  { %s2410_s18 = smov 0   ;;  %s3022_s0 = inlined_call_operand.vmem [shape: f32[2,8,48], index: 0, kind: input, shape index: {}]   ;;  %s3023_s1 = inlined_call_operand.vmem [shape: f32[2,8,128], index: 1, kind: input, shape index: {}]   ;;  %s3024_s2 = inlined_call_operand.vmem [shape: f32[2,8,128], index: 2, kind: input, shape index: {}]   ;;  %s3025_s3 = inlined_call_operand.vmem [shape: f32[16,16], index: 3, kind: input, shape index: {}]   ;;  %s3026_s4 = inlined_call_operand.vmem [shape: bf16[48,128], index: 4, kind: input, shape index: {}]   ;;  %s3027_s5 = inlined_call_operand.vmem [shape: bf16[128,384], index: 5, kind: input, shape index: {}]   ;;  %s3028_s6 = inlined_call_operand.vmem [shape: bf16[128,128], index: 6, kind: input, shape index: {}]   ;;  %s3029_s7 = inlined_call_operand.vmem [shape: f32[1,128], index: 7, kind: input, shape index: {}]   ;;  %s3030_s8 = inlined_call_operand.vmem [shape: f32[1,128], index: 8, kind: input, shape index: {}]   ;;  %s3031_s9 = inlined_call_operand.vmem [shape: f32[1,128], index: 9, kind: input, shape index: {}]   ;;  %s3032_s10 = inlined_call_operand.vmem [shape: f32[1,128], index: 10, kind: input, shape index: {}]   ;;  %s3033_s11 = inlined_call_operand.vmem [shape: bf16[128,512], index: 11, kind: input, shape index: {}]   ;;  %s3034_s12 = inlined_call_operand.vmem [shape: f32[1,512], index: 12, kind: input, shape index: {}]   ;;  %s3035_s13 = inlined_call_operand.vmem [shape: bf16[512,128], index: 13, kind: input, shape index: {}]   ;;  %s3036_s14 = inlined_call_operand.vmem [shape: f32[1,128], index: 14, kind: input, shape index: {}]   ;;  %s3037_s15 = inlined_call_operand.vmem [shape: f32[2,16,128], index: 15, kind: output, shape index: {}]  }
   0x1 LB: > { %s1763_s19 = sadd.s32 4294967295, %s2327_s18   ;;  %p1767_p0 = scmp.ge.s32.totalorder %s2327_s18, 1  ;;  %s2327_s18 = sphi %s2410_s18, %s25_s18  }
   0x2   : > { %p454_p1 = scmp.lt.s32.totalorder %s2327_s18, 3 }
   0x4   : > { %p455_p2 = pnand %p1767_p0, %p454_p1 }
   0x5   : > { %p509_p3 = scmp.lt.s32.totalorder (!%p455_p2), %s1763_s19, 1 }
   0x6   : > { %458 = sbr.rel (%p455_p2) target bundleno = 1827 (0x723), region = 80 }
   0xb   : > { %v2176_v0 = vld [vmem:[%s3026_s4 + $0x10] sm:$0xff]  ;;  %v2175_v1 = vld [vmem:[%s3026_s4 + $0x8] sm:$0xff]  ;;  %s3039_s19 = smov (!%p509_p3, %s1763_s19), 1  ;;  %v2174_v2 = vld [vmem:[%s3026_s4] sm:$0xff]  ;;  %vm554_vm0 = vcmask 392192   ;;  %v2329_v10 = vmov 128.0  }
   0xc   : > { %563 = vmatpush.bf16.msra.mxu0 %v2176_v0  ;;  %s1768_s24 = sshll.u32 %s3039_s19, 3  ;;  %2287 = vrcp.f32 %v2329_v10  ;;  %v1872_v25 = vld [vmem:[%s3027_s5 + $0xa8] sm:$0xf]  ;;  %v2199_v26 = vld [vmem:[%s3027_s5 + $0xb0] sm:$0xf0]  ;;  %vm852_vm8 = vcmask 130048  }
   0xd   : > { %s512_s27 = scalar_lea.vmem %s3022_s0, %s1768_s24  ;;  %s516_s17 = scalar_lea.vmem %s3023_s1, %s1768_s24  ;;  %v2198_v27 = vld [vmem:[%s3027_s5 + $0xac] sm:$0xf]  ;;  %v1873_v28 = vor.u32 %v2199_v26, %v1872_v25  ;;  %v1874_v29 = vld [vmem:[%s3027_s5 + $0xb4] sm:$0xf0]  ;;  %v1880_v30 = vld [vmem:[%s3027_s5 + $0xb0] sm:$0xf] }
   0xe   : > { %v527_v3 = vld [vmem:[%s512_s27] sm:$0xff]  ;;  %s520_s22 = scalar_lea.vmem %s3024_s2, %s1768_s24  ;;  %v2200_v31 = vld [vmem:[%s3027_s5 + $0xb8] sm:$0xf0]  ;;  %v1877_v32 = vor.u32 %v2198_v27, %v1874_v29  ;;  %v1860_v34 = vld [vmem:[%s3027_s5 + $0x90] sm:$0xf]  ;;  %s2173_s29 = sshll.u32 %s3039_s19, 4 }
   0xf   : > { %v528_v4 = vpack.c.bf16 %v527_v3, %v527_v3  ;;  %v535_v5 = vld [vmem:[%s516_s17] sm:$0xff]  ;;  %v1881_v33 = vor.u32 %v2200_v31, %v1880_v30  ;;  %792 = vmatpush.bf16.msra.mxu1 %v1873_v28  ;;  %v2196_v35 = vld [vmem:[%s3027_s5 + $0x98] sm:$0xf0]  ;;  %v2195_v36 = vld [vmem:[%s3027_s5 + $0x94] sm:$0xf]  ;;  %s525_s21 = scalar_lea.vmem %s3037_s15, %s2173_s29 }
  0x10   : > { %564 = vmatpush.bf16.msra.mxu0 %v2175_v1  ;;  %v2442_v9 = vld [vmem:[%s520_s22] sm:$0xff]  ;;  %806 = vmatpush.bf16.msra.mxu2 %v1877_v32  ;;  %v1861_v37 = vor.u32 %v2196_v35, %v1860_v34  ;;  %v1868_v39 = vld [vmem:[%s3027_s5 + $0x98] sm:$0xf]  ;;  %v2192_v45 = vld [vmem:[%s3027_s5 + $0x7c] sm:$0xf] }
  0x11   : > { %820 = vmatpush.bf16.msra.mxu3 %v1881_v33  ;;  %v1862_v38 = vld [vmem:[%s3027_s5 + $0x9c] sm:$0xf0]  ;;  %v2197_v40 = vld [vmem:[%s3027_s5 + $0xa0] sm:$0xf0]  ;;  %v1848_v43 = vld [vmem:[%s3027_s5 + $0x78] sm:$0xf] }
  0x12   : > { %v2288_v11 = vpop.eup %2287  ;;  %v1865_v41 = vor.u32 %v2195_v36, %v1862_v38  ;;  %v1869_v42 = vor.u32 %v2197_v40, %v1868_v39  ;;  %v2193_v44 = vld [vmem:[%s3027_s5 + $0x80] sm:$0xf0]  ;;  %v1850_v47 = vld [vmem:[%s3027_s5 + $0x84] sm:$0xf0]  ;;  %v1856_v48 = vld [vmem:[%s3027_s5 + $0x80] sm:$0xf] }
  0x13   : > { %v579_v12 = vmul.f32 128.0, %v2288_v11  ;;  %vm583_vm1 = vweird.f32 %v2288_v11  ;;  %793 = vmatpush.bf16.msra.mxu1 %v1861_v37  ;;  %v1849_v46 = vor.u32 %v2193_v44, %v1848_v43  ;;  %v2194_v49 = vld [vmem:[%s3027_s5 + $0x88] sm:$0xf0]  ;;  %v1853_v50 = vor.u32 %v2192_v45, %v1850_v47  ;;  %v1836_v52 = vld [vmem:[%s3027_s5 + $0x60] sm:$0xf] }
  0x14   : > { %565 = vmatpush.bf16.msra.mxu0 %v2174_v2  ;;  %807 = vmatpush.bf16.msra.mxu2 %v1865_v41  ;;  %v1857_v51 = vor.u32 %v2194_v49, %v1856_v48  ;;  %v2190_v53 = vld [vmem:[%s3027_s5 + $0x68] sm:$0xf0]  ;;  %v2189_v54 = vld [vmem:[%s3027_s5 + $0x64] sm:$0xf]  ;;  %v1838_v56 = vld [vmem:[%s3027_s5 + $0x6c] sm:$0xf0] }
  0x15   : > { %v580_v13 = vsub.f32 1.0, %v579_v12  ;;  %821 = vmatpush.bf16.msra.mxu3 %v1869_v42  ;;  %v1837_v55 = vor.u32 %v2190_v53, %v1836_v52  ;;  %v1844_v57 = vld [vmem:[%s3027_s5 + $0x68] sm:$0xf]  ;;  %v2191_v58 = vld [vmem:[%s3027_s5 + $0x70] sm:$0xf0]  ;;  %v1841_v59 = vor.u32 %v2189_v54, %v1838_v56 }
  0x16   : > { %v1845_v60 = vor.u32 %v2191_v58, %v1844_v57  ;;  %v1824_v61 = vld [vmem:[%s3027_s5 + $0x48] sm:$0xf]  ;;  %v2187_v62 = vld [vmem:[%s3027_s5 + $0x50] sm:$0xf0]  ;;  %v2186_v63 = vld [vmem:[%s3027_s5 + $0x4c] sm:$0xf] }
  0x17   : > { %1785 = vmatmul.msk.bf16.vlgmr.msra.gmra.mxu0 %vm554_vm0, %v528_v4  ;;  %v581_v14 = vmul.f32 %v2288_v11, %v580_v13  ;;  %794 = vmatpush.bf16.msra.mxu1 %v1849_v46  ;;  %v1825_v0 = vor.u32 %v2187_v62, %v1824_v61  ;;  %v1826_v1 = vld [vmem:[%s3027_s5 + $0x54] sm:$0xf0]  ;;  %v1832_v2 = vld [vmem:[%s3027_s5 + $0x50] sm:$0xf]  ;;  %v2188_v3 = vld [vmem:[%s3027_s5 + $0x58] sm:$0xf0] }
  0x18   : > { %808 = vmatpush.bf16.msra.mxu2 %v1853_v50  ;;  %v1829_v4 = vor.u32 %v2186_v63, %v1826_v1  ;;  %v2183_v10 = vld [vmem:[%s3027_s5 + $0x34] sm:$0xf]  ;;  %v1814_v12 = vld [vmem:[%s3027_s5 + $0x3c] sm:$0xf0]  ;;  %v1820_v13 = vld [vmem:[%s3027_s5 + $0x38] sm:$0xf] }
  0x19   : > { %v582_v15 = vadd.f32 %v2288_v11, %v581_v14  ;;  %822 = vmatpush.bf16.msra.mxu3 %v1857_v51  ;;  %v2185_v14 = vld [vmem:[%s3027_s5 + $0x40] sm:$0xf0]  ;;  %v1808_v25 = vld [vmem:[%s3027_s5 + $0x20] sm:$0xf]  ;;  %v2182_v26 = vld [vmem:[%s3027_s5 + $0x28] sm:$0xf0] }
  0x1a   : > { %v1809_v28 = vor.u32 %v2182_v26, %v1808_v25  ;;  %v1788_v29 = vld [vmem:[%s3027_s5] sm:$0xf]  ;;  %v2178_v30 = vld [vmem:[%s3027_s5 + $0x8] sm:$0xf0]  ;;  %v2177_v31 = vld [vmem:[%s3027_s5 + $0x4] sm:$0xf] }
  0x1b   : > { %v2445_v16 = vsel %vm583_vm1, %v2288_v11, %v582_v15  ;;  %795 = vmatpush.bf16.msra.mxu1 %v1837_v55  ;;  %v1817_v15 = vor.u32 %v2183_v10, %v1814_v12  ;;  %v1789_v33 = vor.u32 %v2178_v30, %v1788_v29  ;;  %v1790_v34 = vld [vmem:[%s3027_s5 + $0xc] sm:$0xf0]  ;;  %v1796_v35 = vld [vmem:[%s3027_s5 + $0x8] sm:$0xf]  ;;  %v2179_v36 = vld [vmem:[%s3027_s5 + $0x10] sm:$0xf0] }
  0x1c   : > { %809 = vmatpush.bf16.msra.mxu2 %v1841_v59  ;;  %v1793_v38 = vor.u32 %v2177_v31, %v1790_v34  ;;  %v1797_v39 = vor.u32 %v2179_v36, %v1796_v35  ;;  %v2282_v57 = vld [vmem:[%s3029_s7] ss:$0 sm:$0xff]  ;;  %v2207_v34 = vld [vmem:[%s3028_s6 + $0x30] sm:$0xff]  ;;  %v2206_v35 = vld [vmem:[%s3028_s6 + $0x28] sm:$0xff] }
  0x1d   : > { %823 = vmatpush.bf16.msra.mxu3 %v1845_v60  ;;  %v2283_v62 = vld [vmem:[%s3030_s8] ss:$0 sm:$0xff] }
  0x1e   : > { %v836_v12 = vld [vmem:[%s3025_s3] sm:$0xff] }
  0x1f   : > { %796 = vmatpush.bf16.msra.mxu1 %v1825_v0  ;;  %v2205_v36 = vld [vmem:[%s3028_s6 + $0x20] sm:$0xff] }
  0x20   : > { %810 = vmatpush.bf16.msra.mxu2 %v1829_v4 }
  0x24   : > { %811 = vmatpush.bf16.msra.mxu2 %v1817_v15 }
  0x94   : > { %v567_v6 = vpop.f32.mrf.mxu0 }
  0x95   : > { %v2436_v7 = vadd.f32 %v567_v6, %v535_v5  ;;  %v1833_v5 = vor.u32 %v2188_v3, %v1832_v2  ;;  %v1812_v6 = vld [vmem:[%s3027_s5 + $0x30] sm:$0xf] }
  0x97   : > { %574 = vadd.xlane.f32.xlu0 %v2436_v7  ;;  %824 = vmatpush.bf16.msra.mxu3 %v1833_v5 }
  0x9c   : > { %v569_v8 = vpop.f32.mrf.mxu0 }
  0x9d   : > { %v2184_v8 = vld [vmem:[%s3027_s5 + $0x38] sm:$0xf0] }
  0x9e   : > { %v1813_v11 = vor.u32 %v2184_v8, %v1812_v6 }
  0x9f   : > { %576 = vadd.xlane.f32.xlu0 %v2442_v9 }
  0xa0   : > { %797 = vmatpush.bf16.msra.mxu1 %v1813_v11 }
 0x10a   : > { %v575_v17 = vpop.xlane.xlu0 %574 }
 0x10b   : > { %v585_v18 = vmul.f32 %v2445_v16, %v575_v17  ;;  %v1821_v17 = vor.u32 %v2185_v14, %v1820_v13 }
 0x10d   : > { %v2449_v19 = vsub.f32 %v2436_v7, %v585_v18  ;;  %825 = vmatpush.bf16.msra.mxu3 %v1821_v17  ;;  %v1800_v18 = vld [vmem:[%s3027_s5 + $0x18] sm:$0xf]  ;;  %v837_v17 = vld [vmem:[%s3025_s3 + $0x8] sm:$0xff] }
 0x10f   : > { %v589_v20 = vmul.f32 %v2449_v19, %v2449_v19 }
 0x111   : > { %591 = vadd.xlane.f32.xlu1 %v589_v20  ;;  %v2181_v20 = vld [vmem:[%s3027_s5 + $0x20] sm:$0xf0]  ;;  %826 = vmatpush.bf16.msra.mxu3 %v1809_v28 }
 0x112   : > { %v577_v21 = vpop.xlane.xlu0 %576 }
 0x113   : > { %v586_v22 = vmul.f32 %v2445_v16, %v577_v21  ;;  %v2180_v21 = vld [vmem:[%s3027_s5 + $0x1c] sm:$0xf] }
 0x115   : > { %v2455_v23 = vsub.f32 %v2442_v9, %v586_v22  ;;  %v1801_v22 = vor.u32 %v2181_v20, %v1800_v18  ;;  %827 = vmatpush.bf16.msra.mxu3 %v1797_v39 }
 0x117   : > { %v590_v24 = vmul.f32 %v2455_v23, %v2455_v23  ;;  %798 = vmatpush.bf16.msra.mxu1 %v1801_v22 }
 0x119   : > { %593 = vadd.xlane.f32.xlu1 %v590_v24  ;;  %v1802_v24 = vld [vmem:[%s3027_s5 + $0x24] sm:$0xf0] }
 0x11a   : > { %v1805_v27 = vor.u32 %v2180_v21, %v1802_v24 }
 0x11b   : > { %799 = vmatpush.bf16.msra.mxu1 %v1789_v33  ;;  %v2208_v33 = vld [vmem:[%s3028_s6 + $0x38] sm:$0xff] }
 0x11c   : > { %812 = vmatpush.bf16.msra.mxu2 %v1805_v27 }
 0x11f   : > { %959 = vmatpush.bf16.msrb.mxu1 %v2208_v33  ;;  %v2230_v33 = vld [vmem:[%s3033_s11 + $0xac] sm:$0xf] }
 0x120   : > { %813 = vmatpush.bf16.msra.mxu2 %v1793_v38 }
 0x123   : > { %960 = vmatpush.bf16.msrb.mxu1 %v2207_v34  ;;  %v2007_v34 = vld [vmem:[%s3033_s11 + $0xb8] sm:$0xf0] }
 0x127   : > { %961 = vmatpush.bf16.msrb.mxu1 %v2206_v35  ;;  %v2010_v35 = vor.u32 %v2230_v33, %v2007_v34  ;;  %v1925_v33 = vld [vmem:[%s3033_s11 + $0x8] sm:$0xf]  ;;  %v2212_v34 = vld [vmem:[%s3033_s11 + $0x14] sm:$0xf0] }
 0x12b   : > { %962 = vmatpush.bf16.msrb.mxu1 %v2205_v36  ;;  %v1981_v36 = vld [vmem:[%s3033_s11 + $0x80] sm:$0xf] }
 0x184   : > { %v592_v32 = vpop.xlane.xlu1 %591 }
 0x185   : > { %v595_v37 = vmul.f32 %v592_v32, %v2445_v16 }
 0x187   : > { %v597_v40 = vadd.f32 1e-05, %v595_v37  ;;  %v2204_v37 = vld [vmem:[%s3028_s6 + $0x18] sm:$0xff] }
 0x188   : > { %963 = vmatpush.bf16.msrb.mxu1 %v2204_v37  ;;  %v2227_v37 = vld [vmem:[%s3033_s11 + $0x8c] sm:$0xf0] }
 0x189   : > { %2289 = vrsqrt.f32 %v597_v40  ;;  %vm605_vm3 = vweird.f32 %v597_v40 }
 0x18c   : > { %v594_v41 = vpop.xlane.xlu1 %593 }
 0x18d   : > { %v596_v42 = vmul.f32 %v594_v41, %v2445_v16 }
 0x18f   : > { %v2290_v43 = vpop.eup %2289  ;;  %v598_v44 = vadd.f32 1e-05, %v596_v42 }
 0x190   : > { %v600_v45 = vmul.f32 %v2290_v43, %v597_v40  ;;  %vm606_vm2 = vweird.f32 %v2290_v43 }
 0x191   : > { %2291 = vrsqrt.f32 %v598_v44  ;;  %vm607_vm4 = vmor %vm605_vm3, %vm606_vm2  ;;  %vm615_vm6 = vweird.f32 %v598_v44 }
 0x192   : > { %v601_v46 = vmul.f32 %v2290_v43, %v600_v45  ;;  %v2203_v45 = vld [vmem:[%s3028_s6 + $0x10] sm:$0xff] }
 0x193   : > { %964 = vmatpush.bf16.msrb.mxu1 %v2203_v45  ;;  %v2226_v45 = vld [vmem:[%s3033_s11 + $0x8c] sm:$0xf] }
 0x194   : > { %v602_v47 = vmul.f32 0.5, %v601_v46  ;;  %v2202_v46 = vld [vmem:[%s3028_s6 + $0x8] sm:$0xff] }
 0x196   : > { %v603_v48 = vsub.f32 1.5, %v602_v47  ;;  %v2201_v47 = vld [vmem:[%s3028_s6] sm:$0xff] }
 0x197   : > { %v2292_v49 = vpop.eup %2291  ;;  %965 = vmatpush.bf16.msrb.mxu1 %v2202_v46  ;;  %v1991_v46 = vld [vmem:[%s3033_s11 + $0x98] sm:$0xf0] }
 0x198   : > { %v604_v50 = vmul.f32 %v2290_v43, %v603_v48  ;;  %v610_v51 = vmul.f32 %v2292_v49, %v598_v44  ;;  %vm616_vm5 = vweird.f32 %v2292_v49 }
 0x199   : > { %vm617_vm7 = vmor %vm615_vm6, %vm616_vm5 }
 0x19a   : > { %v611_v52 = vmul.f32 %v2292_v49, %v610_v51  ;;  %v608_v53 = vsel %vm607_vm4, %v2290_v43, %v604_v50 }
 0x19b   : > { %v619_v56 = vmul.f32 %v608_v53, %v2449_v19  ;;  %966 = vmatpush.bf16.msrb.mxu1 %v2201_v47  ;;  %v1994_v47 = vor.u32 %v2226_v45, %v1991_v46 }
 0x19c   : > { %v612_v54 = vmul.f32 0.5, %v611_v52 }
 0x19d   : > { %v624_v61 = vmul.f32 %v2282_v57, %v619_v56 }
 0x19e   : > { %v613_v55 = vsub.f32 1.5, %v612_v54 }
 0x19f   : > { %v629_v0 = vadd.f32 %v2283_v62, %v624_v61  ;;  %v2029_v61 = vld [vmem:[%s3033_s11 + $0xe0] sm:$0xf] }
 0x1a0   : > { %v614_v58 = vmul.f32 %v2292_v49, %v613_v55 }
 0x1a2   : > { %v618_v59 = vsel %vm617_vm7, %v2292_v49, %v614_v58 }
 0x1a3   : > { %v620_v60 = vmul.f32 %v618_v59, %v2455_v23 }
 0x1a5   : > { %v625_v63 = vmul.f32 %v2282_v57, %v620_v60 }
 0x1a7   : > { %v630_v1 = vadd.f32 %v2283_v62, %v625_v63  ;;  %v2239_v62 = vld [vmem:[%s3033_s11 + $0xec] sm:$0xf0]  ;;  %v2237_v63 = vld [vmem:[%s3033_s11 + $0xe4] sm:$0xf] }
 0x1a9   : > { %v631_v2 = vpack.c.bf16 %v630_v1, %v629_v0  ;;  %v2030_v0 = vor.u32 %v2239_v62, %v2029_v61  ;;  %v2031_v1 = vld [vmem:[%s3033_s11 + $0xf0] sm:$0xf0]  ;;  %v1949_v62 = vld [vmem:[%s3033_s11 + $0x40] sm:$0xf] }
 0x1ab   : > { %800 = vmatmul.bf16.vlgmr.msra.gmra.mxu1 %v631_v2  ;;  %814 = vmatmul.bf16.vlgmr.msra.gmra.mxu2 %v631_v2 }
 0x1ac   : > { %828 = vmatmul.bf16.vlgmr.msra.gmra.mxu3 %v631_v2  ;;  %v2037_v2 = vld [vmem:[%s3033_s11 + $0xe8] sm:$0xf]  ;;  %1230 = vmatpush.bf16.msrb.mxu2 %v2030_v0  ;;  %v2217_v0 = vld [vmem:[%s3033_s11 + $0x44] sm:$0xf] }
 0x228   : > { %v801_v4 = vpop.f32.mrf.mxu1 }
 0x22e   : > { %v815_v19 = vpop.f32.mrf.mxu2 }
 0x22f   : > { %v829_v3 = vpop.f32.mrf.mxu3 }
 0x230   : > { %v803_v23 = vpop.f32.mrf.mxu1 }
 0x231   : > { %v834_v11 = vpack.c.bf16 %v803_v23, %v801_v4  ;;  %v2235_v23 = vld [vmem:[%s3033_s11 + $0xcc] sm:$0xf0] }
 0x236   : > { %v817_v5 = vpop.f32.mrf.mxu2 }
 0x237   : > { %v835_v6 = vpack.c.bf16 %v817_v5, %v815_v19  ;;  %v831_v8 = vpop.f32.mrf.mxu3  ;;  %v2240_v19 = vld [vmem:[%s3033_s11 + $0xf4] sm:$0xf0]  ;;  %v2238_v5 = vld [vmem:[%s3033_s11 + $0xec] sm:$0xf] }
 0x238   : > { %v876_v10 = vpack.c.bf16 %v831_v8, %v829_v3  ;;  %v2034_v3 = vor.u32 %v2237_v63, %v2031_v1  ;;  %v2038_v4 = vor.u32 %v2240_v19, %v2037_v2  ;;  %v2219_v63 = vld [vmem:[%s3033_s11 + $0x4c] sm:$0xf0]  ;;  %v1951_v2 = vld [vmem:[%s3033_s11 + $0x50] sm:$0xf0]  ;;  %v1957_v19 = vld [vmem:[%s3033_s11 + $0x48] sm:$0xf] }
 0x239   : > { %845 = vmatpush.bf16.xpose.msrb.mxu0 %v835_v6  ;;  %v2039_v6 = vld [vmem:[%s3033_s11 + $0xf8] sm:$0xf0]  ;;  %v1950_v1 = vor.u32 %v2219_v63, %v1949_v62  ;;  %v2285_v62 = vld [vmem:[%s3032_s10] ss:$0 sm:$0xff] }
 0x23a   : > { %v2042_v8 = vor.u32 %v2238_v5, %v2039_v6  ;;  %1244 = vmatpush.bf16.msrb.mxu3 %v2034_v3  ;;  %v2220_v3 = vld [vmem:[%s3033_s11 + $0x54] sm:$0xf0]  ;;  %v2218_v6 = vld [vmem:[%s3033_s11 + $0x4c] sm:$0xf] }
 0x23b   : > { %v1958_v5 = vor.u32 %v2220_v3, %v1957_v19  ;;  %v2263_v19 = vld [vmem:[%s3035_s13 + $0xb0] sm:$0xff] }
 0x23c   : > { %1272 = vmatpush.bf16.msra.mxu1 %v2042_v8  ;;  %v1959_v8 = vld [vmem:[%s3033_s11 + $0x58] sm:$0xf0]  ;;  %v2271_v3 = vld [vmem:[%s3035_s13 + $0xf0] sm:$0xff] }
 0x240   : > { %846 = vmatmul.bf16.vlgmr.msrb.gmra.mxu0 %v834_v11  ;;  %v2233_v11 = vld [vmem:[%s3033_s11 + $0xc4] sm:$0xf] }
 0x241   : > { %887 = vmatpush.bf16.msra.mxu0 %v876_v10  ;;  %v2013_v10 = vld [vmem:[%s3033_s11 + $0xc0] sm:$0xf] }
 0x245   : > { %1258 = vmatpush.bf16.msrb.mxu0 %v2038_v4  ;;  %v1954_v4 = vor.u32 %v2217_v0, %v1951_v2 }
 0x2bd   : > { %v847_v13 = vpop.f32.mrf.mxu0 }
 0x2be   : > { %v848_v14 = vadd.f32 %v847_v13, %v836_v12  ;;  %v2014_v12 = vor.u32 %v2235_v23, %v2013_v10  ;;  %v2015_v13 = vld [vmem:[%s3033_s11 + $0xd0] sm:$0xf0]  ;;  %v1962_v10 = vor.u32 %v2218_v6, %v1959_v8  ;;  %v1933_v23 = vld [vmem:[%s3033_s11 + $0x20] sm:$0xf]  ;;  %v2262_v6 = vld [vmem:[%s3035_s13 + $0xa8] sm:$0xff] }
 0x2bf   : > { %v2270_v8 = vld [vmem:[%s3035_s13 + $0xe8] sm:$0xff] }
 0x2c0   : > { %v853_v15 = vsel %vm852_vm8, %v848_v14, -inf  ;;  %1231 = vmatpush.bf16.msrb.mxu2 %v2014_v12  ;;  %v2213_v12 = vld [vmem:[%s3033_s11 + $0x24] sm:$0xf] }
 0x2c1   : > { %854 = vmax.xlane.f32.xlu2 %v853_v15  ;;  %v2236_v15 = vld [vmem:[%s3033_s11 + $0xd4] sm:$0xf0] }
 0x2c5   : > { %v849_v18 = vpop.f32.mrf.mxu0 }
 0x2c6   : > { %v850_v20 = vadd.f32 %v849_v18, %v837_v17  ;;  %v2018_v17 = vor.u32 %v2233_v11, %v2015_v13  ;;  %v2215_v11 = vld [vmem:[%s3033_s11 + $0x2c] sm:$0xf0] }
 0x2c7   : > { %v1934_v13 = vor.u32 %v2215_v11, %v1933_v23  ;;  %v2255_v23 = vld [vmem:[%s3035_s13 + $0x70] sm:$0xff]  ;;  %v2261_v11 = vld [vmem:[%s3035_s13 + $0xa0] sm:$0xff] }
 0x2c8   : > { %v856_v21 = vsel %vm852_vm8, %v850_v20, -inf  ;;  %1245 = vmatpush.bf16.msrb.mxu3 %v2018_v17  ;;  %v2216_v17 = vld [vmem:[%s3033_s11 + $0x34] sm:$0xf0] }
 0x2c9   : > { %857 = vmax.xlane.f32.xlu2 %v856_v21  ;;  %v2023_v21 = vld [vmem:[%s3033_s11 + $0xd8] sm:$0xf0] }
 0x334   : > { %v855_v22 = vpop.xlane.xlu2 %854 }
 0x335   : > { %v859_v24 = vsub.f32 %v848_v14, %v855_v22  ;;  %v2021_v14 = vld [vmem:[%s3033_s11 + $0xc8] sm:$0xf] }
 0x336   : > { %v2022_v18 = vor.u32 %v2236_v15, %v2021_v14  ;;  %v1935_v14 = vld [vmem:[%s3033_s11 + $0x30] sm:$0xf0]  ;;  %v1941_v15 = vld [vmem:[%s3033_s11 + $0x28] sm:$0xf] }
 0x337   : > { %v861_v25 = vmul.f32 1.442695, %v859_v24  ;;  %v1997_v24 = vld [vmem:[%s3033_s11 + $0xa0] sm:$0xf] }
 0x338   : > { %1259 = vmatpush.bf16.msrb.mxu0 %v2022_v18 }
 0x339   : > { %2293 = vpow2.f32 %v861_v25  ;;  %v2231_v25 = vld [vmem:[%s3033_s11 + $0xac] sm:$0xf0] }
 0x33c   : > { %v858_v26 = vpop.xlane.xlu2 %857 }
 0x33d   : > { %v860_v27 = vsub.f32 %v850_v20, %v858_v26  ;;  %v2234_v20 = vld [vmem:[%s3033_s11 + $0xcc] sm:$0xf]  ;;  %v2229_v26 = vld [vmem:[%s3033_s11 + $0xa4] sm:$0xf] }
 0x33e   : > { %v2026_v22 = vor.u32 %v2234_v20, %v2023_v21  ;;  %v1938_v20 = vor.u32 %v2213_v12, %v1935_v14  ;;  %v1942_v21 = vor.u32 %v2216_v17, %v1941_v15  ;;  %v2269_v12 = vld [vmem:[%s3035_s13 + $0xe0] sm:$0xff]  ;;  %v2254_v14 = vld [vmem:[%s3035_s13 + $0x68] sm:$0xff]  ;;  %v2260_v15 = vld [vmem:[%s3035_s13 + $0x98] sm:$0xff] }
 0x33f   : > { %v2294_v28 = vpop.eup %2293  ;;  %v863_v29 = vmul.f32 1.442695, %v860_v27  ;;  %v1998_v27 = vor.u32 %v2231_v25, %v1997_v24  ;;  %v1943_v24 = vld [vmem:[%s3033_s11 + $0x38] sm:$0xf0]  ;;  %v1917_v25 = vld [vmem:[%s3033_s11] sm:$0xf] }
 0x340   : > { %v865_v30 = vsel %vm852_vm8, %v2294_v28, 0.0  ;;  %1273 = vmatpush.bf16.msra.mxu1 %v2026_v22  ;;  %v2214_v22 = vld [vmem:[%s3033_s11 + $0x2c] sm:$0xf]  ;;  %v2268_v17 = vld [vmem:[%s3035_s13 + $0xd8] sm:$0xff] }
 0x341   : > { %2295 = vpow2.f32 %v863_v29  ;;  %866 = vadd.xlane.f32.xlu0 %v865_v30  ;;  %v2005_v29 = vld [vmem:[%s3033_s11 + $0xa8] sm:$0xf]  ;;  %v2232_v30 = vld [vmem:[%s3033_s11 + $0xb4] sm:$0xf0]  ;;  %1232 = vmatpush.bf16.msrb.mxu2 %v1998_v27  ;;  %v1946_v27 = vor.u32 %v2214_v22, %v1943_v24  ;;  %v2267_v22 = vld [vmem:[%s3035_s13 + $0xd0] sm:$0xff] }
 0x342   : > { %v2933_v24 = vld [vmem:[%s3034_s12] sm:$0xf] }
 0x344   : > { %1274 = vmatpush.bf16.msra.mxu1 %v2010_v35  ;;  %v2210_v35 = vld [vmem:[%s3033_s11 + $0xc] sm:$0xf] }
 0x347   : > { %v2296_v31 = vpop.eup %2295 }
 0x348   : > { %v868_v32 = vsel %vm852_vm8, %v2296_v31, 0.0  ;;  %1275 = vmatpush.bf16.msra.mxu1 %v1994_v47 }
 0x349   : > { %869 = vadd.xlane.f32.xlu1 %v868_v32  ;;  %v2006_v32 = vor.u32 %v2232_v30, %v2005_v29  ;;  %v2209_v29 = vld [vmem:[%s3033_s11 + $0x4] sm:$0xf]  ;;  %v1919_v30 = vld [vmem:[%s3033_s11 + $0x10] sm:$0xf0] }
 0x34b   : > { %1260 = vmatpush.bf16.msrb.mxu0 %v2006_v32  ;;  %v1922_v32 = vor.u32 %v2209_v29, %v1919_v30  ;;  %v1064_v29 = vperm.slane %v2933_v24, 2  ;;  %v1065_v30 = vperm.slane %v2933_v24, 3 }
 0x3b4   : > { %v867_v38 = vpop.xlane.xlu0 %866 }
 0x3b5   : > { %2297 = vrcp.f32 %v867_v38  ;;  %v2225_v38 = vld [vmem:[%s3033_s11 + $0x84] sm:$0xf] }
 0x3bb   : > { %v2298_v40 = vpop.eup %2297 }
 0x3bc   : > { %v870_v39 = vpop.xlane.xlu1 %869  ;;  %v873_v42 = vmul.f32 %v2298_v40, %v2294_v28  ;;  %v1999_v28 = vld [vmem:[%s3033_s11 + $0xb0] sm:$0xf0] }
 0x3bd   : > { %2299 = vrcp.f32 %v870_v39  ;;  %v1982_v39 = vor.u32 %v2227_v37, %v1981_v36  ;;  %v1983_v40 = vld [vmem:[%s3033_s11 + $0x90] sm:$0xf0]  ;;  %v1926_v37 = vor.u32 %v2212_v34, %v1925_v33 }
 0x3bf   : > { %1233 = vmatpush.bf16.msrb.mxu2 %v1982_v39 }
 0x3c3   : > { %v2300_v41 = vpop.eup %2299 }
 0x3c4   : > { %v874_v43 = vmul.f32 %v2300_v41, %v2296_v31  ;;  %v2002_v31 = vor.u32 %v2229_v26, %v1999_v28  ;;  %v1989_v41 = vld [vmem:[%s3033_s11 + $0x88] sm:$0xf]  ;;  %v2211_v28 = vld [vmem:[%s3033_s11 + $0xc] sm:$0xf0] }
 0x3c6   : > { %v875_v44 = vpack.c.bf16 %v874_v43, %v873_v42  ;;  %1246 = vmatpush.bf16.msrb.mxu3 %v2002_v31  ;;  %v2228_v42 = vld [vmem:[%s3033_s11 + $0x94] sm:$0xf0]  ;;  %v1986_v43 = vor.u32 %v2225_v38, %v1983_v40  ;;  %v1918_v31 = vor.u32 %v2211_v28, %v1917_v25  ;;  %v1927_v38 = vld [vmem:[%s3033_s11 + $0x18] sm:$0xf0]  ;;  %v2266_v28 = vld [vmem:[%s3035_s13 + $0xc8] sm:$0xff] }
 0x3c7   : > { %v1930_v39 = vor.u32 %v2210_v35, %v1927_v38  ;;  %v2244_v25 = vld [vmem:[%s3035_s13 + $0x18] sm:$0xff]  ;;  %v2257_v35 = vld [vmem:[%s3035_s13 + $0x80] sm:$0xff] }
 0x3c8   : > { %1882 = vmatmul.msk.bf16.vlgmr.msra.gmra.mxu0 %vm852_vm8, %v875_v44  ;;  %v1990_v44 = vor.u32 %v2228_v42, %v1989_v41 }
 0x3ca   : > { %1247 = vmatpush.bf16.msrb.mxu3 %v1986_v43  ;;  %1261 = vmatpush.bf16.msrb.mxu0 %v1990_v44 }
 0x445   : > { %v889_v48 = vpop.f32.mrf.mxu0 }
 0x44d   : > { %v891_v49 = vpop.f32.mrf.mxu0 }
 0x44e   : > { %v894_v50 = vpack.c.bf16 %v891_v49, %v889_v48  ;;  %v1965_v48 = vld [vmem:[%s3033_s11 + $0x60] sm:$0xf]  ;;  %v2223_v49 = vld [vmem:[%s3033_s11 + $0x6c] sm:$0xf0] }
 0x450   : > { %967 = vmatmul.bf16.vlgmr.msrb.gmra.mxu1 %v894_v50  ;;  %v2221_v50 = vld [vmem:[%s3033_s11 + $0x64] sm:$0xf] }
 0x4cd   : > { %v968_v51 = vpop.f32.mrf.mxu1 }
 0x4ce   : > { %v2649_v52 = vadd.f32 %v968_v51, %v2436_v7  ;;  %v1966_v51 = vor.u32 %v2223_v49, %v1965_v48 }
 0x4d0   : > { %977 = vadd.xlane.f32.xlu2 %v2649_v52  ;;  %1234 = vmatpush.bf16.msrb.mxu2 %v1966_v51 }
 0x4d4   : > { %1235 = vmatpush.bf16.msrb.mxu2 %v1950_v1 }
 0x4d5   : > { %v970_v53 = vpop.f32.mrf.mxu1 }
 0x4d6   : > { %v2653_v54 = vadd.f32 %v970_v53, %v2442_v9  ;;  %v1967_v53 = vld [vmem:[%s3033_s11 + $0x70] sm:$0xf0] }
 0x4d8   : > { %979 = vadd.xlane.f32.xlu0 %v2653_v54  ;;  %1236 = vmatpush.bf16.msrb.mxu2 %v1934_v13  ;;  %v2246_v13 = vld [vmem:[%s3035_s13 + $0x28] sm:$0xff] }
 0x4dc   : > { %1237 = vmatpush.bf16.msrb.mxu2 %v1918_v31  ;;  %v2243_v31 = vld [vmem:[%s3035_s13 + $0x10] sm:$0xff] }
 0x543   : > { %v978_v55 = vpop.xlane.xlu2 %977 }
 0x544   : > { %v981_v56 = vmul.f32 %v978_v55, %v2445_v16  ;;  %v1973_v55 = vld [vmem:[%s3033_s11 + $0x68] sm:$0xf] }
 0x546   : > { %v2658_v57 = vsub.f32 %v2649_v52, %v981_v56  ;;  %v2224_v56 = vld [vmem:[%s3033_s11 + $0x74] sm:$0xf0] }
 0x548   : > { %v985_v58 = vmul.f32 %v2658_v57, %v2658_v57 }
 0x54a   : > { %987 = vadd.xlane.f32.xlu1 %v985_v58  ;;  %v1970_v58 = vor.u32 %v2221_v50, %v1967_v53 }
 0x54b   : > { %v980_v7 = vpop.xlane.xlu0 %979 }
 0x54c   : > { %v982_v59 = vmul.f32 %v980_v7, %v2445_v16  ;;  %v1974_v7 = vor.u32 %v2224_v56, %v1973_v55  ;;  %1248 = vmatpush.bf16.msrb.mxu3 %v1970_v58  ;;  %v2284_v58 = vld [vmem:[%s3031_s9] ss:$0 sm:$0xff] }
 0x54e   : > { %v2664_v60 = vsub.f32 %v2653_v54, %v982_v59  ;;  %v2222_v59 = vld [vmem:[%s3033_s11 + $0x6c] sm:$0xf]  ;;  %1262 = vmatpush.bf16.msrb.mxu0 %v1974_v7 }
 0x550   : > { %v986_v9 = vmul.f32 %v2664_v60, %v2664_v60  ;;  %1249 = vmatpush.bf16.msrb.mxu3 %v1954_v4  ;;  %v2248_v4 = vld [vmem:[%s3035_s13 + $0x38] sm:$0xff] }
 0x551   : > { %1618 = vmatpush.bf16.msra.mxu2 %v2248_v4 }
 0x552   : > { %989 = vadd.xlane.f32.xlu2 %v986_v9  ;;  %v1975_v9 = vld [vmem:[%s3033_s11 + $0x78] sm:$0xf0]  ;;  %1263 = vmatpush.bf16.msrb.mxu0 %v1958_v5 }
 0x553   : > { %v1978_v61 = vor.u32 %v2222_v59, %v1975_v9  ;;  %v2256_v5 = vld [vmem:[%s3035_s13 + $0x78] sm:$0xff] }
 0x554   : > { %1250 = vmatpush.bf16.msrb.mxu3 %v1938_v20  ;;  %v2253_v20 = vld [vmem:[%s3035_s13 + $0x60] sm:$0xff] }
 0x555   : > { %1276 = vmatpush.bf16.msra.mxu1 %v1978_v61 }
 0x556   : > { %1264 = vmatpush.bf16.msrb.mxu0 %v1942_v21  ;;  %v2259_v21 = vld [vmem:[%s3035_s13 + $0x90] sm:$0xff] }
 0x558   : > { %1251 = vmatpush.bf16.msrb.mxu3 %v1922_v32  ;;  %v2251_v32 = vld [vmem:[%s3035_s13 + $0x50] sm:$0xff] }
 0x559   : > { %1277 = vmatpush.bf16.msra.mxu1 %v1962_v10  ;;  %v2247_v10 = vld [vmem:[%s3035_s13 + $0x30] sm:$0xff] }
 0x55a   : > { %1265 = vmatpush.bf16.msrb.mxu0 %v1926_v37  ;;  %1619 = vmatpush.bf16.msra.mxu2 %v2247_v10 }
 0x55c   : > { %1632 = vmatpush.bf16.msra.mxu3 %v2256_v5 }
 0x55d   : > { %1278 = vmatpush.bf16.msra.mxu1 %v1946_v27  ;;  %v2258_v27 = vld [vmem:[%s3035_s13 + $0x88] sm:$0xff] }
 0x55e   : > { %1620 = vmatpush.bf16.msra.mxu2 %v2246_v13 }
 0x560   : > { %1633 = vmatpush.bf16.msra.mxu3 %v2255_v23 }
 0x561   : > { %1279 = vmatpush.bf16.msra.mxu1 %v1930_v39  ;;  %v1062_v39 = vperm.slane %v2933_v24, 0 }
 0x564   : > { %1634 = vmatpush.bf16.msra.mxu3 %v2254_v14 }
 0x568   : > { %1635 = vmatpush.bf16.msra.mxu3 %v2253_v20 }
 0x5bd   : > { %v988_v18 = vpop.xlane.xlu1 %987 }
 0x5be   : > { %v991_v26 = vmul.f32 %v988_v18, %v2445_v16  ;;  %v2245_v18 = vld [vmem:[%s3035_s13 + $0x20] sm:$0xff] }
 0x5bf   : > { %1621 = vmatpush.bf16.msra.mxu2 %v2245_v18 }
 0x5c0   : > { %v993_v36 = vadd.f32 1e-05, %v991_v26  ;;  %v2252_v26 = vld [vmem:[%s3035_s13 + $0x58] sm:$0xff] }
 0x5c1   : > { %1636 = vmatpush.bf16.msra.mxu3 %v2252_v26 }
 0x5c2   : > { %2301 = vrsqrt.f32 %v993_v36  ;;  %vm1001_vm10 = vweird.f32 %v993_v36 }
 0x5c3   : > { %1622 = vmatpush.bf16.msra.mxu2 %v2244_v25 }
 0x5c5   : > { %v990_v40 = vpop.xlane.xlu2 %989  ;;  %1637 = vmatpush.bf16.msra.mxu3 %v2251_v32 }
 0x5c6   : > { %v992_v41 = vmul.f32 %v990_v40, %v2445_v16  ;;  %v1063_v40 = vperm.slane %v2933_v24, 1 }
 0x5c7   : > { %1623 = vmatpush.bf16.msra.mxu2 %v2243_v31 }
 0x5c8   : > { %v2302_v42 = vpop.eup %2301  ;;  %v994_v43 = vadd.f32 1e-05, %v992_v41  ;;  %v2242_v41 = vld [vmem:[%s3035_s13 + $0x8] sm:$0xff] }
 0x5c9   : > { %v996_v44 = vmul.f32 %v2302_v42, %v993_v36  ;;  %vm1002_vm9 = vweird.f32 %v2302_v42  ;;  %v2265_v36 = vld [vmem:[%s3035_s13 + $0xc0] sm:$0xff] }
 0x5ca   : > { %2303 = vrsqrt.f32 %v994_v43  ;;  %vm1003_vm11 = vmor %vm1001_vm10, %vm1002_vm9  ;;  %vm1011_vm13 = vweird.f32 %v994_v43 }
 0x5cb   : > { %v997_v45 = vmul.f32 %v2302_v42, %v996_v44  ;;  %1624 = vmatpush.bf16.msra.mxu2 %v2242_v41 }
 0x5cd   : > { %v998_v46 = vmul.f32 0.5, %v997_v45 }
 0x5cf   : > { %v999_v47 = vsub.f32 1.5, %v998_v46 }
 0x5d0   : > { %v2304_v48 = vpop.eup %2303 }
 0x5d1   : > { %v1000_v49 = vmul.f32 %v2302_v42, %v999_v47  ;;  %v1006_v50 = vmul.f32 %v2304_v48, %v994_v43  ;;  %vm1012_vm12 = vweird.f32 %v2304_v48 }
 0x5d2   : > { %vm1013_vm14 = vmor %vm1011_vm13, %vm1012_vm12 }
 0x5d3   : > { %v1007_v51 = vmul.f32 %v2304_v48, %v1006_v50  ;;  %v1004_v53 = vsel %vm1003_vm11, %v2302_v42, %v1000_v49  ;;  %v2250_v42 = vld [vmem:[%s3035_s13 + $0x48] sm:$0xff] }
 0x5d4   : > { %v1015_v16 = vmul.f32 %v1004_v53, %v2658_v57  ;;  %v2264_v57 = vld [vmem:[%s3035_s13 + $0xb8] sm:$0xff]  ;;  %1638 = vmatpush.bf16.msra.mxu3 %v2250_v42  ;;  %v2249_v53 = vld [vmem:[%s3035_s13 + $0x40] sm:$0xff] }
 0x5d5   : > { %v1008_v55 = vmul.f32 0.5, %v1007_v51  ;;  %1646 = vmatpush.bf16.msra.mxu0 %v2264_v57  ;;  %v2241_v51 = vld [vmem:[%s3035_s13] sm:$0xff] }
 0x5d6   : > { %v1020_v61 = vmul.f32 %v2284_v58, %v1015_v16  ;;  %1625 = vmatpush.bf16.msra.mxu2 %v2241_v51 }
 0x5d7   : > { %v1009_v56 = vsub.f32 1.5, %v1008_v55 }
 0x5d8   : > { %v1025_v0 = vadd.f32 %v2285_v62, %v1020_v61  ;;  %1639 = vmatpush.bf16.msra.mxu3 %v2249_v53 }
 0x5d9   : > { %v1010_v7 = vmul.f32 %v2304_v48, %v1009_v56  ;;  %1647 = vmatpush.bf16.msra.mxu0 %v2263_v19 }
 0x5db   : > { %v1014_v59 = vsel %vm1013_vm14, %v2304_v48, %v1010_v7 }
 0x5dc   : > { %v1016_v9 = vmul.f32 %v1014_v59, %v2664_v60  ;;  %v2272_v60 = vld [vmem:[%s3035_s13 + $0xf8] sm:$0xff] }
 0x5dd   : > { %1660 = vmatpush.bf16.msrb.mxu1 %v2272_v60  ;;  %1648 = vmatpush.bf16.msra.mxu0 %v2262_v6 }
 0x5de   : > { %v1021_v63 = vmul.f32 %v2284_v58, %v1016_v9 }
 0x5e0   : > { %v1026_v1 = vadd.f32 %v2285_v62, %v1021_v63 }
 0x5e1   : > { %1661 = vmatpush.bf16.msrb.mxu1 %v2271_v3  ;;  %1649 = vmatpush.bf16.msra.mxu0 %v2261_v11 }
 0x5e2   : > { %v1027_v2 = vpack.c.bf16 %v1026_v1, %v1025_v0 }
 0x5e4   : > { %1238 = vmatmul.bf16.vlgmr.msrb.gmra.mxu2 %v1027_v2  ;;  %1252 = vmatmul.bf16.vlgmr.msrb.gmra.mxu3 %v1027_v2 }
 0x5e5   : > { %1266 = vmatmul.bf16.vlgmr.msrb.gmra.mxu0 %v1027_v2  ;;  %1280 = vmatmul.bf16.vlgmr.msra.gmra.mxu1 %v1027_v2 }
 0x5e6   : > { %1662 = vmatpush.bf16.msrb.mxu1 %v2270_v8  ;;  %1650 = vmatpush.bf16.msra.mxu0 %v2260_v15 }
 0x5ea   : > { %1663 = vmatpush.bf16.msrb.mxu1 %v2269_v12  ;;  %1651 = vmatpush.bf16.msra.mxu0 %v2259_v21 }
 0x5ee   : > { %1664 = vmatpush.bf16.msrb.mxu1 %v2268_v17  ;;  %1652 = vmatpush.bf16.msra.mxu0 %v2258_v27 }
 0x5f2   : > { %1665 = vmatpush.bf16.msrb.mxu1 %v2267_v22  ;;  %1653 = vmatpush.bf16.msra.mxu0 %v2257_v35 }
 0x5f6   : > { %1666 = vmatpush.bf16.msrb.mxu1 %v2266_v28 }
 0x5fa   : > { %1667 = vmatpush.bf16.msrb.mxu1 %v2265_v36 }
 0x662   : > { %v1267_v33 = vpop.f32.mrf.mxu0  ;;  %v1281_v34 = vpop.f32.mrf.mxu1 }
 0x663   : > { %v2961_v37 = vadd.f32 %v1267_v33, %v1064_v29  ;;  %v2963_v38 = vadd.f32 %v1281_v34, %v1065_v30 }
 0x665   : > { %v1288_v43 = vmul.f32 %v2961_v37, %v2961_v37  ;;  %v1289_v44 = vmul.f32 %v2963_v38, %v2963_v38 }
 0x667   : > { %v1296_v45 = vmul.f32 %v1288_v43, %v2961_v37  ;;  %v1297_v46 = vmul.f32 %v1289_v44, %v2963_v38  ;;  %v1239_v47 = vpop.f32.mrf.mxu2  ;;  %v1253_v48 = vpop.f32.mrf.mxu3 }
 0x668   : > { %v2979_v49 = vadd.f32 %v1239_v47, %v1062_v39  ;;  %v2981_v50 = vadd.f32 %v1253_v48, %v1063_v40 }
 0x669   : > { %v1304_v55 = vmul.f32 0.044715, %v1296_v45  ;;  %v1305_v56 = vmul.f32 0.044715, %v1297_v46 }
 0x66a   : > { %v1286_v16 = vmul.f32 %v2979_v49, %v2979_v49  ;;  %v1287_v58 = vmul.f32 %v2981_v50, %v2981_v50  ;;  %v1269_v7 = vpop.f32.mrf.mxu0  ;;  %v1283_v59 = vpop.f32.mrf.mxu1 }
 0x66b   : > { %v1312_v9 = vadd.f32 %v1304_v55, %v2961_v37  ;;  %v1313_v61 = vadd.f32 %v1305_v56, %v2963_v38  ;;  %v1270_v62 = vadd.f32 %v1269_v7, %v1064_v29  ;;  %v2995_v63 = vadd.f32 %v1283_v59, %v1065_v30 }
 0x66c   : > { %v1294_v0 = vmul.f32 %v1286_v16, %v2979_v49  ;;  %v1295_v1 = vmul.f32 %v1287_v58, %v2981_v50 }
 0x66d   : > { %v1320_v2 = vmul.f32 0.7978846, %v1312_v9  ;;  %v1292_v57 = vmul.f32 %v1270_v62, %v1270_v62  ;;  %v1293_v60 = vmul.f32 %v2995_v63, %v2995_v63  ;;  %v1321_v19 = vmul.f32 0.7978846, %v1313_v61 }
 0x66e   : > { %v1302_v3 = vmul.f32 0.044715, %v1294_v0  ;;  %v1303_v4 = vmul.f32 0.044715, %v1295_v1 }
 0x66f   : > { %v1300_v5 = vmul.f32 %v1292_v57, %v1270_v62  ;;  %v1301_v6 = vmul.f32 %v1293_v60, %v2995_v63  ;;  %v1241_v8 = vpop.f32.mrf.mxu2  ;;  %v1255_v10 = vpop.f32.mrf.mxu3  ;;  %2305 = vtanh.f32 %v1320_v2 }
 0x670   : > { %v1310_v23 = vadd.f32 %v1302_v3, %v2979_v49  ;;  %v1311_v11 = vadd.f32 %v1303_v4, %v2981_v50  ;;  %v1242_v12 = vadd.f32 %v1241_v8, %v1062_v39  ;;  %v1256_v15 = vadd.f32 %v1255_v10, %v1063_v40 }
 0x671   : > { %v1308_v13 = vmul.f32 0.044715, %v1300_v5  ;;  %v1309_v14 = vmul.f32 0.044715, %v1301_v6  ;;  %2307 = vtanh.f32 %v1321_v19 }
 0x672   : > { %v1318_v17 = vmul.f32 0.7978846, %v1310_v23  ;;  %v1319_v18 = vmul.f32 0.7978846, %v1311_v11  ;;  %v1290_v20 = vmul.f32 %v1242_v12, %v1242_v12  ;;  %v1291_v24 = vmul.f32 %v1256_v15, %v1256_v15 }
 0x673   : > { %v1316_v21 = vadd.f32 %v1308_v13, %v1270_v62  ;;  %v1317_v22 = vadd.f32 %v1309_v14, %v2995_v63 }
 0x674   : > { %v1298_v25 = vmul.f32 %v1290_v20, %v1242_v12  ;;  %2309 = vtanh.f32 %v1318_v17  ;;  %v1299_v28 = vmul.f32 %v1291_v24, %v1256_v15 }
 0x675   : > { %v1324_v26 = vmul.f32 0.7978846, %v1316_v21  ;;  %v1325_v27 = vmul.f32 0.7978846, %v1317_v22  ;;  %2311 = vtanh.f32 %v1319_v18  ;;  %v2306_v30 = vpop.eup %2305 }
 0x676   : > { %v1306_v29 = vmul.f32 0.044715, %v1298_v25  ;;  %v1307_v31 = vmul.f32 0.044715, %v1299_v28  ;;  %v1336_v35 = vadd.f32 1.0, %v2306_v30 }
 0x677   : > { %2313 = vtanh.f32 %v1324_v26  ;;  %v2308_v32 = vpop.eup %2307 }
 0x678   : > { %2315 = vtanh.f32 %v1325_v27  ;;  %v1314_v33 = vadd.f32 %v1306_v29, %v1242_v12  ;;  %v1315_v34 = vadd.f32 %v1307_v31, %v1256_v15  ;;  %v1337_v40 = vadd.f32 1.0, %v2308_v32 }
 0x679   : > { %v1344_v45 = vmul.f32 0.5, %v1336_v35 }
 0x67a   : > { %v1322_v36 = vmul.f32 0.7978846, %v1314_v33  ;;  %v2310_v39 = vpop.eup %2309  ;;  %v1323_v41 = vmul.f32 0.7978846, %v1315_v34  ;;  %v1345_v47 = vmul.f32 0.5, %v1337_v40 }
 0x67b   : > { %v2312_v42 = vpop.eup %2311  ;;  %v1334_v48 = vadd.f32 1.0, %v2310_v39  ;;  %v1352_v58 = vmul.f32 %v1344_v45, %v2961_v37 }
 0x67c   : > { %2317 = vtanh.f32 %v1322_v36  ;;  %v1335_v53 = vadd.f32 1.0, %v2312_v42  ;;  %v1353_v9 = vmul.f32 %v1345_v47, %v2963_v38 }
 0x67d   : > { %v2314_v43 = vpop.eup %2313  ;;  %2319 = vtanh.f32 %v1323_v41  ;;  %v1342_v61 = vmul.f32 0.5, %v1334_v48 }
 0x67e   : > { %v2316_v44 = vpop.eup %2315  ;;  %v1340_v46 = vadd.f32 1.0, %v2314_v43  ;;  %v1343_v2 = vmul.f32 0.5, %v1335_v53 }
 0x67f   : > { %v1341_v51 = vadd.f32 1.0, %v2316_v44  ;;  %v1350_v5 = vmul.f32 %v1342_v61, %v2979_v49  ;;  %v2286_v49 = vld [vmem:[%s3036_s14] ss:$0 sm:$0xff] }
 0x680   : > { %v1348_v55 = vmul.f32 0.5, %v1340_v46  ;;  %v1351_v37 = vmul.f32 %v1343_v2, %v2981_v50 }
 0x681   : > { %v1349_v56 = vmul.f32 0.5, %v1341_v51 }
 0x682   : > { %v2318_v16 = vpop.eup %2317  ;;  %v1356_v7 = vmul.f32 %v1348_v55, %v1270_v62 }
 0x683   : > { %v2320_v59 = vpop.eup %2319  ;;  %v1357_v0 = vmul.f32 %v1349_v56, %v2995_v63  ;;  %v1338_v1 = vadd.f32 1.0, %v2318_v16 }
 0x684   : > { %v1339_v57 = vadd.f32 1.0, %v2320_v59  ;;  %v1360_v60 = vpack.c.bf16 %v1356_v7, %v1352_v58 }
 0x685   : > { %v1346_v19 = vmul.f32 0.5, %v1338_v1  ;;  %v1361_v3 = vpack.c.bf16 %v1357_v0, %v1353_v9 }
 0x686   : > { %v1347_v4 = vmul.f32 0.5, %v1339_v57  ;;  %1654 = vmatmul.bf16.vlgmr.msra.gmra.mxu0 %v1360_v60 }
 0x687   : > { %v1354_v6 = vmul.f32 %v1346_v19, %v1242_v12  ;;  %1668 = vmatmul.bf16.vlgmr.msrb.gmra.mxu1 %v1361_v3 }
 0x688   : > { %v1355_v62 = vmul.f32 %v1347_v4, %v1256_v15 }
 0x689   : > { %v1358_v38 = vpack.c.bf16 %v1354_v6, %v1350_v5 }
 0x68a   : > { %v1359_v8 = vpack.c.bf16 %v1355_v62, %v1351_v37 }
 0x68b   : > { %1626 = vmatmul.bf16.vlgmr.msra.gmra.mxu2 %v1358_v38 }
 0x68c   : > { %1640 = vmatmul.bf16.vlgmr.msra.gmra.mxu3 %v1359_v8 }
 0x703   : > { %v1655_v10 = vpop.f32.mrf.mxu0 }
 0x704   : > { %v1669_v13 = vpop.f32.mrf.mxu1 }
 0x70b   : > { %v1657_v21 = vpop.f32.mrf.mxu0 }
 0x70c   : > { %v1671_v24 = vpop.f32.mrf.mxu1 }
 0x70e   : > { %v1627_v63 = vpop.f32.mrf.mxu2 }
 0x70f   : > { %v1641_v23 = vpop.f32.mrf.mxu3 }
 0x710   : > { %v1642_v11 = vadd.f32 %v1641_v23, %v1627_v63 }
 0x712   : > { %v1656_v14 = vadd.f32 %v1655_v10, %v1642_v11 }
 0x714   : > { %v1670_v17 = vadd.f32 %v1669_v13, %v1656_v14 }
 0x716   : > { %v1674_v12 = vadd.f32 %v1670_v17, %v2649_v52  ;;  %v1629_v50 = vpop.f32.mrf.mxu2 }
 0x717   : > { %v1643_v15 = vpop.f32.mrf.mxu3 }
 0x718   : > { %v1680_v18 = vadd.f32 %v2286_v49, %v1674_v12  ;;  %v1644_v20 = vadd.f32 %v1643_v15, %v1629_v50 }
 0x71a   : > { %1682 = vst [vmem:[%s525_s21] sm:$0xff] %v1680_v18  ;;  %v1658_v22 = vadd.f32 %v1657_v21, %v1644_v20 }
 0x71c   : > { %v1672_v25 = vadd.f32 %v1671_v24, %v1658_v22 }
 0x71e   : > { %v1675_v26 = vadd.f32 %v1672_v25, %v2653_v54 }
 0x720   : > { %v1681_v27 = vadd.f32 %v2286_v49, %v1675_v26 }
 0x722   : > { %1683 = vst [vmem:[%s525_s21 + $0x8] sm:$0xff] %v1681_v27 }
 0x723 PF: > { %s25_s18 = sadd.s32 1, %s2327_s18  }
 0x724   : > { %p22_p4 = scmp.ge.s32.totalorder %s25_s18, 4  }
 0x726   :  { %24 = sbr.rel (!%p22_p4) target bundleno = 1 (0x1), region = 116 }

</bundles_post_ra>
